<compile_context>
chip_gen: v6e
topology: v6e:2x2x1
jax: 0.10.0
libtpu: 0.0.40
codegen_flags: <defaults>
</compile_context>

<pallas_src>
import jax
import jax.numpy as jnp
from jax.experimental import pallas as pl
from jax.experimental.pallas import tpu as pltpu

# ----- synthetic config -----------------------------------------------------
N_SUB = 10                      # MultiBlock.nSub
N_TREE_TOTAL = 20               # config_0.nTree
N_EACH_TREE = N_TREE_TOTAL // N_SUB
DEPTH = 3                       # tree depth
N_LEAF = 2 ** DEPTH
RESPONSE_DIM = 4                # config.response_dim

# ----- lane-dense layout constants ------------------------------------------
T = N_TREE_TOTAL                # 20
D = DEPTH                       # 3
L = N_LEAF                      # 8
R = RESPONSE_DIM                # 4
TD = T * D                      # 60   (tree, depth)      -> bins layout
TD_PAD = 128                    # pad TD to one full lane vreg
TL = T * L                      # 160  (tree, leaf)       -> routing weights
TL_PAD = 256                    # pad TL to a multiple of 128
W_EXP = D * TL_PAD              # 768  expanded (d-major) gated-term layout
T_OUT = 128                     # output trees padded to one full lane vreg
RT_OUT = R * T_OUT              # 512  r-major response columns


# ----- Pallas kernel: the whole MultiBlock hot path -------------------------
def _multiblock_kernel(x_ref, w_ref, thr_ref, temp_ref, e_ref, sign_ref,
                       offs_ref, resp_ref, bw_ref, out_ref):
    # feature choice (softmax already folded into w): one MXU matmul
    fv = jnp.dot(x_ref[...], w_ref[...],
                 preferred_element_type=jnp.float32)           # [Bt, 128]

    # soft binning on the compact [Bt, T*D] layout (EUP work stays small)
    bins = jax.nn.sigmoid((fv - thr_ref[...]) * temp_ref[...])  # [Bt, 128]

    # expand bins to the per-(depth, tree, leaf) layout with a 0/1 MXU matmul,
    # then apply the leaf bit codes as a single fused multiply-add:
    #   gated = code ? bin : (1 - bin)  ==  sign * bin + offset
    bexp = jnp.dot(bins, e_ref[...],
                   preferred_element_type=jnp.float32)          # [Bt, 768]
    gated = sign_ref[...] * bexp + offs_ref[...]                # [Bt, 768]

    # routing weights: product over depth of three 128-aligned lane slices
    rw = (gated[:, 0:TL_PAD]
          * gated[:, TL_PAD:2 * TL_PAD]
          * gated[:, 2 * TL_PAD:3 * TL_PAD])                    # [Bt, 256]

    # leaf responses: one MXU matmul against the block-diagonal response
    # matrix; columns are r-major (column r*128 + t = tree t, response r)
    acc = jnp.dot(rw, resp_ref[...],
                  preferred_element_type=jnp.float32)           # [Bt, 512]

    # DecisionBlock tail: leaf_distri + max_out (regression) over R=4,
    # as jnp.maximum over 128-lane-aligned static slices (pure VPU)
    m01 = jnp.maximum(acc[:, 0:T_OUT], acc[:, T_OUT:2 * T_OUT])
    m23 = jnp.maximum(acc[:, 2 * T_OUT:3 * T_OUT], acc[:, 3 * T_OUT:4 * T_OUT])
    out = jnp.maximum(m01, m23)                                 # [Bt, 128]

    # MultiBlock tail: per-tree block_weight scale; dense 128-lane store
    out_ref[...] = out * bw_ref[...]                            # bw: [1, 128]


def _pick_batch_tile(batch, max_tile=512):
    """Large row tiles (mem/overhead-bound kernel); >=2 steps when possible
    so the 'parallel' batch axis can be split across v7x's two TensorCores."""
    if batch <= max_tile:
        return batch                       # single block == full batch dim
    tile = min(max_tile, -(-batch // 2))   # ceil(batch/2), capped
    return ((tile + 7) // 8) * 8           # sublane-aligned


def multiblock_forward(x, packed, *, batch_tile=None):
    B, F = x.shape
    if batch_tile is None:
        batch_tile = _pick_batch_tile(B)
    grid = (pl.cdiv(B, batch_tile),)

    out_padded = pl.pallas_call(
        _multiblock_kernel,
        out_shape=jax.ShapeDtypeStruct((B, T_OUT), jnp.float32),
        grid=grid,
        in_specs=[
            pl.BlockSpec((batch_tile, F), lambda i: (i, 0)),      # x
            pl.BlockSpec((F, TD_PAD), lambda i: (0, 0)),          # softmax(feat_attention), padded
            pl.BlockSpec((1, TD_PAD), lambda i: (0, 0)),          # thresholds (flat, padded)
            pl.BlockSpec((1, TD_PAD), lambda i: (0, 0)),          # exp(-log_temperatures)
            pl.BlockSpec((TD_PAD, W_EXP), lambda i: (0, 0)),      # 0/1 bin->leaf expansion
            pl.BlockSpec((1, W_EXP), lambda i: (0, 0)),           # code sign  (2c-1)
            pl.BlockSpec((1, W_EXP), lambda i: (0, 0)),           # code offset (1-c)
            pl.BlockSpec((TL_PAD, RT_OUT), lambda i: (0, 0)),     # block-diag leaf responses
            pl.BlockSpec((1, T_OUT), lambda i: (0, 0)),           # block_weight per tree (padded)
        ],
        out_specs=pl.BlockSpec((batch_tile, T_OUT), lambda i: (i, 0)),
        compiler_params=pltpu.CompilerParams(
            dimension_semantics=("parallel",)),
    )(x, packed['w'], packed['thr'], packed['temp'], packed['E'],
      packed['sign'], packed['offs'], packed['resp'], packed['bw'])

    return out_padded[:, :T]


# ----- one-time parameter packing (grid-invariant math hoisted here) --------
def pack_params(raw):
    F = raw['wsel'].shape[0]

    # softmax feature choice, lane-padded to 128
    w_soft = jax.nn.softmax(raw['wsel'], axis=0)                       # [F, 60]
    w_p = jnp.zeros((F, TD_PAD), jnp.float32).at[:, :TD].set(w_soft)

    thr_p = jnp.zeros((1, TD_PAD), jnp.float32).at[0, :TD].set(
        raw['thr'].reshape(TD))
    temp_p = jnp.ones((1, TD_PAD), jnp.float32).at[0, :TD].set(
        jnp.exp(-raw['ltemp']).reshape(TD))

    # bin -> (depth-major, tree, leaf) expansion matrix and code gating consts
    dd, tt, ll = jnp.meshgrid(jnp.arange(D), jnp.arange(T), jnp.arange(L),
                              indexing='ij')
    rows = (tt * D + dd).reshape(-1)
    cols = (dd * TL_PAD + tt * L + ll).reshape(-1)
    E = jnp.zeros((TD_PAD, W_EXP), jnp.float32).at[rows, cols].set(1.0)

    codes = raw['codes']                                               # [L, D]
    sign = jnp.zeros((1, W_EXP), jnp.float32).at[0, cols].set(
        (2.0 * codes - 1.0)[ll.reshape(-1), dd.reshape(-1)])
    offs = jnp.ones((1, W_EXP), jnp.float32).at[0, cols].set(
        (1.0 - codes)[ll.reshape(-1), dd.reshape(-1)])                 # pad cols -> gated == 1

    # block-diagonal leaf responses; output columns r-major, T padded to 128
    tt2, ll2, rr2 = jnp.meshgrid(jnp.arange(T), jnp.arange(L), jnp.arange(R),
                                 indexing='ij')
    rrows = (tt2 * L + ll2).reshape(-1)
    rcols = (rr2 * T_OUT + tt2).reshape(-1)
    big_resp = jnp.zeros((TL_PAD, RT_OUT), jnp.float32).at[rrows, rcols].set(
        raw['resp'].reshape(-1))

    # per-tree block weight (block-major tree order == torch.cat(..., dim=1)),
    # zero-padded so pad output columns are exactly zero
    bw = jnp.repeat(raw['block_weight'], N_EACH_TREE)                  # [T]
    bw_p = jnp.zeros((1, T_OUT), jnp.float32).at[0, :T].set(bw)

    return dict(w=w_p, thr=thr_p, temp=temp_p, E=E, sign=sign, offs=offs,
                resp=big_resp, bw=bw_p)


# ----- pure-JAX reference (same math, raw params) ----------------------------
def _reference(x, p):
    B = x.shape[0]
    w = jax.nn.softmax(p['wsel'], axis=0)
    fv = (x @ w).reshape(B, T, D)
    bins = jax.nn.sigmoid((fv - p['thr'][None]) * jnp.exp(-p['ltemp'])[None])
    c = p['codes']
    terms = (c[None, None] * bins[:, :, None, :]
             + (1.0 - c[None, None]) * (1.0 - bins[:, :, None, :]))
    rw = jnp.prod(terms, axis=-1)                                      # [B, T, L]
    out = jnp.einsum('btl,tlr->btr', rw, p['resp'])
    out = jnp.max(out, axis=-1)                                        # [B, T]
    bw = jnp.repeat(p['block_weight'], N_EACH_TREE)[None, :]
    return out * bw


# ----- deterministic parameter construction (mirrors __init__ shapes) -------
def make_params(key, input_dim):
    ks = jax.random.split(key, 4)
    # block_weight = nn.Parameter(torch.Tensor(nSub).uniform_())
    block_weight = jax.random.uniform(ks[0], (N_SUB,), jnp.float32)
    # Per-tree params of the nSub DecisionBlocks, stacked block-major over T.
    wsel = jax.random.uniform(ks[1], (input_dim, T * D), jnp.float32)   # feat_attention
    thr = jax.random.uniform(ks[2], (T, D), jnp.float32,
                             minval=-1.0, maxval=1.0)                   # thresholds
    ltemp = jnp.zeros((T, D), jnp.float32)                              # log_temperatures
    resp = jax.random.normal(ks[3], (T, L, R), jnp.float32)             # leaf responses
    # binary code of each leaf along the depth axis
    codes = ((jnp.arange(L)[:, None] >> jnp.arange(D)[None, :]) & 1
             ).astype(jnp.float32)
    return dict(block_weight=block_weight, wsel=wsel, thr=thr, ltemp=ltemp,
                resp=resp, codes=codes)


if __name__ == "__main__":
    key = jax.random.PRNGKey(0)
    k_x, k_x2, k_p = jax.random.split(key, 3)
    F = 16
    raw = make_params(k_p, F)
    packed = pack_params(raw)

    # small batch: single grid step (block == full batch dim)
    x_small = jax.random.normal(k_x, (64, F), jnp.float32)
    out_small = jax.block_until_ready(multiblock_forward(x_small, packed))
    assert out_small.shape == (64, N_SUB * N_EACH_TREE), out_small.shape
    ref_small = _reference(x_small, raw)
    # tolerance covers MXU f32-pass rounding differences vs. XLA reference
    assert jnp.allclose(out_small, ref_small, atol=5e-3, rtol=5e-3), (
        float(jnp.max(jnp.abs(out_small - ref_small))))

    # larger batch: 2 grid steps of 512 rows (keeps both v7x TCs busy)
    x_big = jax.random.normal(k_x2, (1024, F), jnp.float32)
    out_big = jax.block_until_ready(multiblock_forward(x_big, packed))
    assert out_big.shape == (1024, N_SUB * N_EACH_TREE), out_big.shape
    ref_big = _reference(x_big, raw)
    assert jnp.allclose(out_big, ref_big, atol=5e-3, rtol=5e-3), (
        float(jnp.max(jnp.abs(out_big - ref_big))))

    print("KERNEL_OK")
</pallas_src>

<mosaic_0001>
module attributes {stable_mosaic.version = 11 : i64} {
  func.func @_multiblock_kernel(%arg0: i32, %arg1: memref<64x16xf32, #tpu.memory_space<vmem>>, %arg2: memref<16x128xf32, #tpu.memory_space<vmem>>, %arg3: memref<1x128xf32, #tpu.memory_space<vmem>>, %arg4: memref<1x128xf32, #tpu.memory_space<vmem>>, %arg5: memref<128x768xf32, #tpu.memory_space<vmem>>, %arg6: memref<1x768xf32, #tpu.memory_space<vmem>>, %arg7: memref<1x768xf32, #tpu.memory_space<vmem>>, %arg8: memref<256x512xf32, #tpu.memory_space<vmem>>, %arg9: memref<1x128xf32, #tpu.memory_space<vmem>>, %arg10: memref<64x128xf32, #tpu.memory_space<vmem>>) attributes {dimension_semantics = [#tpu.dimension_semantics<parallel>], iteration_bounds = array<i64: 1>, scalar_prefetch = 0 : i64, scratch_operands = 0 : i64, tpu.core_type = #tpu.core_type<tc>, window_params = [{transform_indices = @transform_0, window_bounds = array<i64: 64, 16>}, {pipeline_mode = #tpu.pipeline_mode<synchronous>, transform_indices = @transform_1, window_bounds = array<i64: 16, 128>}, {pipeline_mode = #tpu.pipeline_mode<synchronous>, transform_indices = @transform_2, window_bounds = array<i64: 1, 128>}, {pipeline_mode = #tpu.pipeline_mode<synchronous>, transform_indices = @transform_3, window_bounds = array<i64: 1, 128>}, {pipeline_mode = #tpu.pipeline_mode<synchronous>, transform_indices = @transform_4, window_bounds = array<i64: 128, 768>}, {pipeline_mode = #tpu.pipeline_mode<synchronous>, transform_indices = @transform_5, window_bounds = array<i64: 1, 768>}, {pipeline_mode = #tpu.pipeline_mode<synchronous>, transform_indices = @transform_6, window_bounds = array<i64: 1, 768>}, {pipeline_mode = #tpu.pipeline_mode<synchronous>, transform_indices = @transform_7, window_bounds = array<i64: 256, 512>}, {pipeline_mode = #tpu.pipeline_mode<synchronous>, transform_indices = @transform_8, window_bounds = array<i64: 1, 128>}, {transform_indices = @transform_9, window_bounds = array<i64: 64, 128>}]} {
    %c0 = arith.constant 0 : index
    %c0_0 = arith.constant 0 : index
    %0 = vector.load %arg1[%c0, %c0_0] : memref<64x16xf32, #tpu.memory_space<vmem>>, vector<64x16xf32>
    %c0_1 = arith.constant 0 : index
    %c0_2 = arith.constant 0 : index
    %1 = vector.load %arg2[%c0_1, %c0_2] : memref<16x128xf32, #tpu.memory_space<vmem>>, vector<16x128xf32>
    %cst = arith.constant dense<0.000000e+00> : vector<64x128xf32>
    %2 = tpu.matmul %0, %1, %cst {dimension_numbers = #tpu.dot_dimension_numbers<[1], [0], [0], [1], [0, 0, 1, 1], [], []>} : vector<64x16xf32>, vector<16x128xf32>, vector<64x128xf32> -> vector<64x128xf32>
    %c0_3 = arith.constant 0 : index
    %c0_4 = arith.constant 0 : index
    %3 = vector.load %arg3[%c0_3, %c0_4] : memref<1x128xf32, #tpu.memory_space<vmem>>, vector<1x128xf32>
    %4 = vector.broadcast %3 : vector<1x128xf32> to vector<64x128xf32>
    %5 = arith.subf %2, %4 : vector<64x128xf32>
    %c0_5 = arith.constant 0 : index
    %c0_6 = arith.constant 0 : index
    %6 = vector.load %arg4[%c0_5, %c0_6] : memref<1x128xf32, #tpu.memory_space<vmem>>, vector<1x128xf32>
    %7 = vector.broadcast %6 : vector<1x128xf32> to vector<64x128xf32>
    %8 = arith.mulf %5, %7 : vector<64x128xf32>
    %9 = arith.negf %8 : vector<64x128xf32>
    %10 = math.exp %9 : vector<64x128xf32>
    %cst_7 = arith.constant 1.000000e+00 : f32
    %11 = vector.broadcast %cst_7 : f32 to vector<64x128xf32>
    %12 = arith.addf %11, %10 : vector<64x128xf32>
    %13 = arith.divf %11, %12 : vector<64x128xf32>
    %c0_8 = arith.constant 0 : index
    %c0_9 = arith.constant 0 : index
    %14 = vector.load %arg5[%c0_8, %c0_9] : memref<128x768xf32, #tpu.memory_space<vmem>>, vector<128x768xf32>
    %cst_10 = arith.constant dense<0.000000e+00> : vector<64x768xf32>
    %15 = tpu.matmul %13, %14, %cst_10 {dimension_numbers = #tpu.dot_dimension_numbers<[1], [0], [0], [1], [0, 0, 1, 1], [], []>} : vector<64x128xf32>, vector<128x768xf32>, vector<64x768xf32> -> vector<64x768xf32>
    %c0_11 = arith.constant 0 : index
    %c0_12 = arith.constant 0 : index
    %16 = vector.load %arg6[%c0_11, %c0_12] : memref<1x768xf32, #tpu.memory_space<vmem>>, vector<1x768xf32>
    %17 = vector.broadcast %16 : vector<1x768xf32> to vector<64x768xf32>
    %18 = arith.mulf %17, %15 : vector<64x768xf32>
    %c0_13 = arith.constant 0 : index
    %c0_14 = arith.constant 0 : index
    %19 = vector.load %arg7[%c0_13, %c0_14] : memref<1x768xf32, #tpu.memory_space<vmem>>, vector<1x768xf32>
    %20 = vector.broadcast %19 : vector<1x768xf32> to vector<64x768xf32>
    %21 = arith.addf %18, %20 : vector<64x768xf32>
    %22 = vector.extract_strided_slice %21 {offsets = [0, 0], sizes = [64, 256], strides = [1, 1]} : vector<64x768xf32> to vector<64x256xf32>
    %23 = vector.extract_strided_slice %21 {offsets = [0, 256], sizes = [64, 256], strides = [1, 1]} : vector<64x768xf32> to vector<64x256xf32>
    %24 = arith.mulf %22, %23 : vector<64x256xf32>
    %25 = vector.extract_strided_slice %21 {offsets = [0, 512], sizes = [64, 256], strides = [1, 1]} : vector<64x768xf32> to vector<64x256xf32>
    %26 = arith.mulf %24, %25 : vector<64x256xf32>
    %c0_15 = arith.constant 0 : index
    %c0_16 = arith.constant 0 : index
    %27 = vector.load %arg8[%c0_15, %c0_16] : memref<256x512xf32, #tpu.memory_space<vmem>>, vector<256x512xf32>
    %cst_17 = arith.constant dense<0.000000e+00> : vector<64x512xf32>
    %28 = tpu.matmul %26, %27, %cst_17 {dimension_numbers = #tpu.dot_dimension_numbers<[1], [0], [0], [1], [0, 0, 1, 1], [], []>} : vector<64x256xf32>, vector<256x512xf32>, vector<64x512xf32> -> vector<64x512xf32>
    %29 = vector.extract_strided_slice %28 {offsets = [0, 0], sizes = [64, 128], strides = [1, 1]} : vector<64x512xf32> to vector<64x128xf32>
    %30 = vector.extract_strided_slice %28 {offsets = [0, 128], sizes = [64, 128], strides = [1, 1]} : vector<64x512xf32> to vector<64x128xf32>
    %31 = arith.maximumf %29, %30 : vector<64x128xf32>
    %32 = vector.extract_strided_slice %28 {offsets = [0, 256], sizes = [64, 128], strides = [1, 1]} : vector<64x512xf32> to vector<64x128xf32>
    %33 = vector.extract_strided_slice %28 {offsets = [0, 384], sizes = [64, 128], strides = [1, 1]} : vector<64x512xf32> to vector<64x128xf32>
    %34 = arith.maximumf %32, %33 : vector<64x128xf32>
    %35 = arith.maximumf %31, %34 : vector<64x128xf32>
    %c0_18 = arith.constant 0 : index
    %c0_19 = arith.constant 0 : index
    %36 = vector.load %arg9[%c0_18, %c0_19] : memref<1x128xf32, #tpu.memory_space<vmem>>, vector<1x128xf32>
    %37 = vector.broadcast %36 : vector<1x128xf32> to vector<64x128xf32>
    %38 = arith.mulf %35, %37 : vector<64x128xf32>
    %c0_20 = arith.constant 0 : index
    %c0_21 = arith.constant 0 : index
    %39 = vector.load %arg10[%c0_20, %c0_21] : memref<64x128xf32, #tpu.memory_space<vmem>>, vector<64x128xf32>
    tpu.vector_store %arg10[%c0_20, %c0_21], %38 {strides = array<i32>} : memref<64x128xf32, #tpu.memory_space<vmem>>, vector<64x128xf32>,
    return
  }
  func.func @transform_0(%arg0: i32) -> (i32, i32) {
    %c0_i32 = arith.constant 0 : i32
    %c0_i32_0 = arith.constant 0 : i32
    return %arg0, %c0_i32 : i32, i32
  }
  func.func @transform_1(%arg0: i32) -> (i32, i32) {
    %c0_i32 = arith.constant 0 : i32
    %c0_i32_0 = arith.constant 0 : i32
    %c0_i32_1 = arith.constant 0 : i32
    return %c0_i32, %c0_i32_0 : i32, i32
  }
  func.func @transform_2(%arg0: i32) -> (i32, i32) {
    %c0_i32 = arith.constant 0 : i32
    %c0_i32_0 = arith.constant 0 : i32
    %c0_i32_1 = arith.constant 0 : i32
    return %c0_i32, %c0_i32_0 : i32, i32
  }
  func.func @transform_3(%arg0: i32) -> (i32, i32) {
    %c0_i32 = arith.constant 0 : i32
    %c0_i32_0 = arith.constant 0 : i32
    %c0_i32_1 = arith.constant 0 : i32
    return %c0_i32, %c0_i32_0 : i32, i32
  }
  func.func @transform_4(%arg0: i32) -> (i32, i32) {
    %c0_i32 = arith.constant 0 : i32
    %c0_i32_0 = arith.constant 0 : i32
    %c0_i32_1 = arith.constant 0 : i32
    return %c0_i32, %c0_i32_0 : i32, i32
  }
  func.func @transform_5(%arg0: i32) -> (i32, i32) {
    %c0_i32 = arith.constant 0 : i32
    %c0_i32_0 = arith.constant 0 : i32
    %c0_i32_1 = arith.constant 0 : i32
    return %c0_i32, %c0_i32_0 : i32, i32
  }
  func.func @transform_6(%arg0: i32) -> (i32, i32) {
    %c0_i32 = arith.constant 0 : i32
    %c0_i32_0 = arith.constant 0 : i32
    %c0_i32_1 = arith.constant 0 : i32
    return %c0_i32, %c0_i32_0 : i32, i32
  }
  func.func @transform_7(%arg0: i32) -> (i32, i32) {
    %c0_i32 = arith.constant 0 : i32
    %c0_i32_0 = arith.constant 0 : i32
    %c0_i32_1 = arith.constant 0 : i32
    return %c0_i32, %c0_i32_0 : i32, i32
  }
  func.func @transform_8(%arg0: i32) -> (i32, i32) {
    %c0_i32 = arith.constant 0 : i32
    %c0_i32_0 = arith.constant 0 : i32
    %c0_i32_1 = arith.constant 0 : i32
    return %c0_i32, %c0_i32_0 : i32, i32
  }
  func.func @transform_9(%arg0: i32) -> (i32, i32) {
    %c0_i32 = arith.constant 0 : i32
    %c0_i32_0 = arith.constant 0 : i32
    return %arg0, %c0_i32 : i32, i32
  }
}

</mosaic_0001>

<bundles_post_ra>
// kernel: tpu_custom_call.1
= control target key start
LH: loop header
LB: loop body
LE: loop exit
PB: predicated region body
PF: predicated region fallthrough
CT: control target
= control target key end

     0   :  { %14 = vsyncpa [#allocation3], 0  ;;  %s1827_s0 = inlined_call_operand.vmem [shape: f32[64,16], index: 0, kind: input, shape index: {}]   ;;  %s1828_s1 = inlined_call_operand.vmem [shape: f32[16,128], index: 1, kind: input, shape index: {}]   ;;  %s1829_s2 = inlined_call_operand.vmem [shape: f32[1,128], index: 2, kind: input, shape index: {}]   ;;  %s1830_s3 = inlined_call_operand.vmem [shape: f32[1,128], index: 3, kind: input, shape index: {}]   ;;  %s1831_s4 = inlined_call_operand.hbm [shape: f32[128,768], index: 4, kind: input, shape index: {}]   ;;  %s1832_s5 = inlined_call_operand.vmem [shape: f32[1,768], index: 5, kind: input, shape index: {}]   ;;  %s1833_s6 = inlined_call_operand.vmem [shape: f32[1,768], index: 6, kind: input, shape index: {}]   ;;  %s1834_s7 = inlined_call_operand.hbm [shape: f32[256,512], index: 7, kind: input, shape index: {}]   ;;  %s1835_s8 = inlined_call_operand.vmem [shape: f32[1,128], index: 8, kind: input, shape index: {}]   ;;  %s1836_s9 = inlined_call_operand.hbm [shape: f32[64,128], index: 9, kind: output, shape index: {}]  }
   0x1   :  { %15 = vsyncpa [#allocation6], 0 }
   0x2   :  { %16 = vsyncpa [#allocation4], 0  ;;  %s1478_s30 = smov [#allocation2]  }
   0x3   :  { %s30_s10 = sshll.u32 %s1478_s30, 4  ;;  %s31_s10 = int_to_ptr.vmem [resolvable:$true] %s30_s10 }
   0x4   :  { %s1420_s11 = scalar_lea.vmem %s31_s10, 12288  ;;  %p1425_p1 = scmp.lt.s32.totalorder %s31_s10, %s31_s10 }
   0x5   :  { %p1421_p0 = scmp.ne.s32.totalorder %s31_s10, %s1420_s11  ;;  %p1426_p2 = scmp.lt.s32.totalorder %s1420_s11, %s1420_s11 }
   0x7   :  { %p1427_p3 = por %p1426_p2, %p1425_p1 }
   0x9   :  { %p1428_p4 = pnand %p1427_p3, %p1421_p0 }
   0xb   :  { %1431 = shalt.err (!%p1428_p4)
}
   0xc   :  { %s1479_s12 = smov 768   ;;  %s1480_s13 = smov 48  }
   0xd   :  { %36 = dma.hbm_to_vmem [thread:$0]  %s1831_s4, 12288, %s31_s10, [#allocation3], %s1479_s12, %s1479_s12, %s1480_s13  }
   0xe   :  { %s1481_s16 = smov [#allocation5]  }
   0xf   :  { %s46_s17 = sshll.u32 %s1481_s16, 4  ;;  %s47_s17 = int_to_ptr.vmem [resolvable:$true] %s46_s17 }
  0x10   :  { %s1440_s18 = scalar_lea.vmem %s47_s17, 16384  ;;  %p1445_p6 = scmp.lt.s32.totalorder %s47_s17, %s47_s17 }
  0x11   :  { %p1441_p5 = scmp.ne.s32.totalorder %s47_s17, %s1440_s18  ;;  %p1446_p7 = scmp.lt.s32.totalorder %s1440_s18, %s1440_s18 }
  0x13   :  { %p1447_p8 = por %p1446_p7, %p1445_p6 }
  0x15   :  { %p1448_p9 = pnand %p1447_p8, %p1441_p5 }
  0x17   :  { %1451 = shalt.err (!%p1448_p9)
}
  0x18   :  { %s1482_s19 = smov 512   ;;  %s1483_s20 = smov 32  }
  0x19   :  { %52 = dma.hbm_to_vmem [thread:$0]  %s1834_s7, 16384, %s47_s17, [#allocation6], %s1482_s19, %s1482_s19, %s1483_s20  }
  0x1a   :  { %1472 = dma.done.wait [#allocation3], 12288  }
  0x1b   :  { %1473 = vsyncadd [#allocation3], 4294955008 }
  0x1c   :  { %1474 = dma.done.wait [#allocation6], 16384  }
  0x1d   :  { %1475 = vsyncadd [#allocation6], 4294950912  ;;  %vm71_vm0 = vcmask 130048   ;;  %v70_v0 = vld [vmem:[%s1828_s1 + $0x8] sm:$0xff]  ;;  %v69_v1 = vld [vmem:[%s1828_s1] sm:$0xff] }
  0x1e   :  { %v61_v2 = vld [vmem:[%s1827_s0] sm:$0xff]  ;;  %1354 = vmatprep.subr.mxu0 %v70_v0  ;;  %v62_v3 = vld [vmem:[%s1827_s0 + $0x8] sm:$0xff]  ;;  %v63_v4 = vld [vmem:[%s1827_s0 + $0x10] sm:$0xff] }
  0x1f   :  { %1358 = vmatprep.mubr.msk.f32.mxu0 %vm71_vm0, %v61_v2  ;;  %1355 = vmatpush3.msra.mxu0 %v70_v0  ;;  %v64_v5 = vld [vmem:[%s1827_s0 + $0x18] sm:$0xff]  ;;  %v65_v6 = vld [vmem:[%s1827_s0 + $0x20] sm:$0xff]  ;;  %v66_v7 = vld [vmem:[%s1827_s0 + $0x28] sm:$0xff] }
  0x20   :  { %1356 = vmatprep.subr.mxu0 %v69_v1  ;;  %v67_v8 = vld [vmem:[%s1827_s0 + $0x30] sm:$0xff]  ;;  %v68_v9 = vld [vmem:[%s1827_s0 + $0x38] sm:$0xff]  ;;  %v372_v11 = vld [vmem:[#allocation2 + $0x2e8] sm:$0xff] }
  0x21   :  { %1357 = vmatpush3.msra.mxu0 %v69_v1  ;;  %v370_v10 = vld [vmem:[#allocation2 + $0x2d8] sm:$0xff]  ;;  %v369_v12 = vld [vmem:[#allocation2 + $0x2d0] sm:$0xff]  ;;  %v371_v13 = vld [vmem:[#allocation2 + $0x2e0] sm:$0xff] }
  0x22   :  { %1359 = vmatmul.mubr.msk.f32.vlgmr.msra.gmra.mxu0 %vm71_vm0, %v62_v3  ;;  %375 = vmatprep.subr.mxu1 %v370_v10  ;;  %v364_v14 = vld [vmem:[#allocation2 + $0x2a8] sm:$0xff]  ;;  %v366_v15 = vld [vmem:[#allocation2 + $0x2b8] sm:$0xff]  ;;  %v363_v16 = vld [vmem:[#allocation2 + $0x2a0] sm:$0xff] }
  0x23   :  { %1361 = vmatprep.mubr.msk.f32.mxu0 %vm71_vm0, %v63_v4  ;;  %488 = vmatprep.subr.mxu0 %v372_v11  ;;  %v365_v17 = vld [vmem:[#allocation2 + $0x2b0] sm:$0xff]  ;;  %v358_v18 = vld [vmem:[#allocation2 + $0x278] sm:$0xff]  ;;  %v360_v19 = vld [vmem:[#allocation2 + $0x288] sm:$0xff]  ;;  %v1484_v11 = vmov 0.0  }
  0x24   :  { %376 = vmatpush1.msra.mxu1 %v369_v12  ;;  %489 = vmatpush1.msra.mxu0 %v371_v13  ;;  %v357_v20 = vld [vmem:[#allocation2 + $0x270] sm:$0xff]  ;;  %v359_v21 = vld [vmem:[#allocation2 + $0x280] sm:$0xff]  ;;  %v352_v22 = vld [vmem:[#allocation2 + $0x248] sm:$0xff] }
  0x25   :  { %377 = vmatprep.subr.mxu1 %v364_v14  ;;  %490 = vmatprep.subr.mxu0 %v366_v15  ;;  %v354_v23 = vld [vmem:[#allocation2 + $0x258] sm:$0xff]  ;;  %v351_v24 = vld [vmem:[#allocation2 + $0x240] sm:$0xff]  ;;  %v353_v25 = vld [vmem:[#allocation2 + $0x250] sm:$0xff] }
  0x26   :  { %1362 = vmatmul.mubr.msk.f32.gmra.mxu0 %vm71_vm0, %v64_v5  ;;  %378 = vmatpush1.msra.mxu1 %v363_v16  ;;  %v346_v26 = vld [vmem:[#allocation2 + $0x218] sm:$0xff]  ;;  %v348_v27 = vld [vmem:[#allocation2 + $0x228] sm:$0xff]  ;;  %v345_v28 = vld [vmem:[#allocation2 + $0x210] sm:$0xff] }
  0x27   :  { %1364 = vmatprep.mubr.msk.f32.mxu0 %vm71_vm0, %v65_v6  ;;  %491 = vmatpush1.msra.mxu0 %v365_v17  ;;  %v347_v29 = vld [vmem:[#allocation2 + $0x220] sm:$0xff]  ;;  %v340_v30 = vld [vmem:[#allocation2 + $0x1e8] sm:$0xff]  ;;  %v342_v31 = vld [vmem:[#allocation2 + $0x1f8] sm:$0xff] }
  0x28   :  { %379 = vmatprep.subr.mxu1 %v358_v18  ;;  %492 = vmatprep.subr.mxu0 %v360_v19  ;;  %v339_v32 = vld [vmem:[#allocation2 + $0x1e0] sm:$0xff]  ;;  %v341_v33 = vld [vmem:[#allocation2 + $0x1f0] sm:$0xff]  ;;  %v334_v34 = vld [vmem:[#allocation2 + $0x1b8] sm:$0xff] }
  0x29   :  { %380 = vmatpush1.msra.mxu1 %v357_v20  ;;  %493 = vmatpush1.msra.mxu0 %v359_v21  ;;  %v336_v35 = vld [vmem:[#allocation2 + $0x1c8] sm:$0xff]  ;;  %v333_v36 = vld [vmem:[#allocation2 + $0x1b0] sm:$0xff]  ;;  %v335_v37 = vld [vmem:[#allocation2 + $0x1c0] sm:$0xff] }
  0x2a   :  { %1365 = vmatmul.mubr.msk.f32.gmra.mxu0 %vm71_vm0, %v66_v7  ;;  %381 = vmatprep.subr.mxu1 %v352_v22  ;;  %v328_v38 = vld [vmem:[#allocation2 + $0x188] sm:$0xff]  ;;  %v330_v39 = vld [vmem:[#allocation2 + $0x198] sm:$0xff]  ;;  %v327_v40 = vld [vmem:[#allocation2 + $0x180] sm:$0xff] }
  0x2b   :  { %1367 = vmatprep.mubr.msk.f32.mxu0 %vm71_vm0, %v67_v8  ;;  %494 = vmatprep.subr.mxu0 %v354_v23  ;;  %v329_v41 = vld [vmem:[#allocation2 + $0x190] sm:$0xff]  ;;  %v322_v42 = vld [vmem:[#allocation2 + $0x158] sm:$0xff]  ;;  %v324_v43 = vld [vmem:[#allocation2 + $0x168] sm:$0xff] }
  0x2c   :  { %382 = vmatpush1.msra.mxu1 %v351_v24  ;;  %495 = vmatpush1.msra.mxu0 %v353_v25  ;;  %v321_v44 = vld [vmem:[#allocation2 + $0x150] sm:$0xff]  ;;  %v323_v45 = vld [vmem:[#allocation2 + $0x160] sm:$0xff]  ;;  %v316_v46 = vld [vmem:[#allocation2 + $0x128] sm:$0xff] }
  0x2d   :  { %383 = vmatprep.subr.mxu1 %v346_v26  ;;  %496 = vmatprep.subr.mxu0 %v348_v27  ;;  %v318_v47 = vld [vmem:[#allocation2 + $0x138] sm:$0xff]  ;;  %v315_v48 = vld [vmem:[#allocation2 + $0x120] sm:$0xff]  ;;  %v317_v49 = vld [vmem:[#allocation2 + $0x130] sm:$0xff] }
  0x2e   :  { %1368 = vmatmul.mubr.msk.f32.gmra.mxu0 %vm71_vm0, %v68_v9  ;;  %384 = vmatpush1.msra.mxu1 %v345_v28  ;;  %v310_v50 = vld [vmem:[#allocation2 + $0xf8] sm:$0xff]  ;;  %v312_v51 = vld [vmem:[#allocation2 + $0x108] sm:$0xff]  ;;  %v309_v52 = vld [vmem:[#allocation2 + $0xf0] sm:$0xff] }
  0x2f   :  { %497 = vmatpush1.msra.mxu0 %v347_v29  ;;  %385 = vmatprep.subr.mxu1 %v340_v30  ;;  %v311_v53 = vld [vmem:[#allocation2 + $0x100] sm:$0xff]  ;;  %v304_v54 = vld [vmem:[#allocation2 + $0xc8] sm:$0xff]  ;;  %v306_v55 = vld [vmem:[#allocation2 + $0xd8] sm:$0xff] }
  0x30   :  { %498 = vmatprep.subr.mxu0 %v342_v31  ;;  %386 = vmatpush1.msra.mxu1 %v339_v32  ;;  %v303_v56 = vld [vmem:[#allocation2 + $0xc0] sm:$0xff]  ;;  %v305_v57 = vld [vmem:[#allocation2 + $0xd0] sm:$0xff]  ;;  %v298_v58 = vld [vmem:[#allocation2 + $0x98] sm:$0xff] }
  0x31   :  { %499 = vmatpush1.msra.mxu0 %v341_v33  ;;  %387 = vmatprep.subr.mxu1 %v334_v34  ;;  %v300_v59 = vld [vmem:[#allocation2 + $0xa8] sm:$0xff]  ;;  %v297_v60 = vld [vmem:[#allocation2 + $0x90] sm:$0xff]  ;;  %v299_v61 = vld [vmem:[#allocation2 + $0xa0] sm:$0xff] }
  0x32   :  { %500 = vmatprep.subr.mxu0 %v336_v35  ;;  %388 = vmatpush1.msra.mxu1 %v333_v36  ;;  %v292_v62 = vld [vmem:[#allocation2 + $0x68] sm:$0xff]  ;;  %v294_v63 = vld [vmem:[#allocation2 + $0x78] sm:$0xff]  ;;  %v291_v0 = vld [vmem:[#allocation2 + $0x60] sm:$0xff] }
  0x33   :  { %501 = vmatpush1.msra.mxu0 %v335_v37  ;;  %389 = vmatprep.subr.mxu1 %v328_v38  ;;  %v293_v1 = vld [vmem:[#allocation2 + $0x70] sm:$0xff]  ;;  %v286_v2 = vld [vmem:[#allocation2 + $0x38] sm:$0xff]  ;;  %v288_v3 = vld [vmem:[#allocation2 + $0x48] sm:$0xff] }
  0x34   :  { %502 = vmatprep.subr.mxu0 %v330_v39  ;;  %390 = vmatpush1.msra.mxu1 %v327_v40  ;;  %v285_v4 = vld [vmem:[#allocation2 + $0x30] sm:$0xff]  ;;  %v287_v5 = vld [vmem:[#allocation2 + $0x40] sm:$0xff]  ;;  %v280_v6 = vld [vmem:[#allocation2 + $0x8] sm:$0xff] }
  0x35   :  { %503 = vmatpush1.msra.mxu0 %v329_v41  ;;  %391 = vmatprep.subr.mxu1 %v322_v42  ;;  %v282_v7 = vld [vmem:[#allocation2 + $0x18] sm:$0xff]  ;;  %v279_v8 = vld [vmem:[#allocation2] sm:$0xff]  ;;  %v281_v9 = vld [vmem:[#allocation2 + $0x10] sm:$0xff] }
  0x36   :  { %504 = vmatprep.subr.mxu0 %v324_v43  ;;  %392 = vmatpush1.msra.mxu1 %v321_v44  ;;  %v374_v10 = vld [vmem:[#allocation2 + $0x2f8] sm:$0xff]  ;;  %v967_v12 = vld [vmem:[#allocation5 + $0x1e8] sm:$0xff]  ;;  %v1333_v13 = vld [vmem:[%s1829_s2] ss:$0 sm:$0xff] }
  0x37   :  { %505 = vmatpush1.msra.mxu0 %v323_v45  ;;  %393 = vmatprep.subr.mxu1 %v316_v46  ;;  %v1334_v15 = vld [vmem:[%s1830_s3] ss:$0 sm:$0xff] }
  0x38   :  { %506 = vmatprep.subr.mxu0 %v318_v47  ;;  %394 = vmatpush1.msra.mxu1 %v315_v48 }
  0x39   :  { %507 = vmatpush1.msra.mxu0 %v317_v49  ;;  %395 = vmatprep.subr.mxu1 %v310_v50 }
  0x3a   :  { %508 = vmatprep.subr.mxu0 %v312_v51  ;;  %396 = vmatpush1.msra.mxu1 %v309_v52 }
  0x3b   :  { %509 = vmatpush1.msra.mxu0 %v311_v53  ;;  %397 = vmatprep.subr.mxu1 %v304_v54 }
  0x3c   :  { %510 = vmatprep.subr.mxu0 %v306_v55  ;;  %398 = vmatpush1.msra.mxu1 %v303_v56 }
  0x3d   :  { %511 = vmatpush1.msra.mxu0 %v305_v57  ;;  %399 = vmatprep.subr.mxu1 %v298_v58  ;;  %v373_v58 = vld [vmem:[#allocation2 + $0x2f0] sm:$0xff] }
  0x3e   :  { %512 = vmatprep.subr.mxu0 %v300_v59  ;;  %400 = vmatpush1.msra.mxu1 %v297_v60  ;;  %v368_v60 = vld [vmem:[#allocation2 + $0x2c8] sm:$0xff] }
  0x3f   :  { %513 = vmatpush1.msra.mxu0 %v299_v61  ;;  %401 = vmatprep.subr.mxu1 %v292_v62  ;;  %v367_v61 = vld [vmem:[#allocation2 + $0x2c0] sm:$0xff] }
  0x40   :  { %514 = vmatprep.subr.mxu0 %v294_v63  ;;  %402 = vmatpush1.msra.mxu1 %v291_v0  ;;  %v966_v62 = vld [vmem:[#allocation5 + $0x1e0] sm:$0xff]  ;;  %v362_v63 = vld [vmem:[#allocation2 + $0x298] sm:$0xff] }
  0x41   :  { %515 = vmatpush1.msra.mxu0 %v293_v1  ;;  %403 = vmatprep.subr.mxu1 %v286_v2  ;;  %v361_v2 = vld [vmem:[#allocation2 + $0x290] sm:$0xff] }
  0x42   :  { %516 = vmatprep.subr.mxu0 %v288_v3  ;;  %404 = vmatpush1.msra.mxu1 %v285_v4  ;;  %v356_v4 = vld [vmem:[#allocation2 + $0x268] sm:$0xff] }
  0x43   :  { %517 = vmatpush1.msra.mxu0 %v287_v5  ;;  %405 = vmatprep.subr.mxu1 %v280_v6  ;;  %v355_v5 = vld [vmem:[#allocation2 + $0x260] sm:$0xff]  ;;  %v350_v6 = vld [vmem:[#allocation2 + $0x238] sm:$0xff] }
  0x44   :  { %518 = vmatprep.subr.mxu0 %v282_v7  ;;  %406 = vmatpush1.msra.mxu1 %v279_v8 }
  0x45   :  { %439 = vmatprep.mubr.f32.mxu1 %v1484_v11  ;;  %519 = vmatpush1.msra.mxu0 %v281_v9  ;;  %v349_v9 = vld [vmem:[#allocation2 + $0x230] sm:$0xff] }
  0x46   :  { %552 = vmatprep.mubr.f32.mxu0 %v1484_v11  ;;  %601 = vmatprep.subr.mxu1 %v374_v10 }
  0x47   :  { %1034 = vmatprep.subr.mxu0 %v967_v12  ;;  %v344_v12 = vld [vmem:[#allocation2 + $0x208] sm:$0xff] }
  0xe2   :  { %v1360_v14 = vpop.f32.mrf.mxu0 }
  0xe3   :  { %v209_v16 = vsub.f32 %v1360_v14, %v1333_v13  ;;  %v338_v14 = vld [vmem:[#allocation2 + $0x1d8] sm:$0xff] }
  0xe4   :  { %v162_v17 = vpop.f32.mrf.mxu0 }
  0xe5   :  { %v224_v18 = vmul.f32 %v1334_v15, %v209_v16  ;;  %v208_v19 = vsub.f32 %v162_v17, %v1333_v13  ;;  %v337_v16 = vld [vmem:[#allocation2 + $0x1d0] sm:$0xff] }
  0xe6   :  { %v1363_v20 = vpop.f32.mrf.mxu0 }
  0xe7   :  { %v1336_v21 = vmul.f32 -1.442695, %v224_v18  ;;  %v223_v22 = vmul.f32 %v1334_v15, %v208_v19  ;;  %v211_v23 = vsub.f32 %v1363_v20, %v1333_v13  ;;  %v332_v18 = vld [vmem:[#allocation2 + $0x1a8] sm:$0xff]  ;;  %v331_v19 = vld [vmem:[#allocation2 + $0x1a0] sm:$0xff]  ;;  %v326_v20 = vld [vmem:[#allocation2 + $0x178] sm:$0xff] }
  0xe8   :  { %v172_v24 = vpop.f32.mrf.mxu0 }
  0xe9   :  { %v1335_v25 = vmul.f32 -1.442695, %v223_v22  ;;  %v210_v26 = vsub.f32 %v172_v24, %v1333_v13  ;;  %1380 = vpow2.f32 %v1336_v21  ;;  %v226_v28 = vmul.f32 %v1334_v15, %v211_v23  ;;  %v325_v21 = vld [vmem:[#allocation2 + $0x170] sm:$0xff]  ;;  %v320_v23 = vld [vmem:[#allocation2 + $0x148] sm:$0xff]  ;;  %v319_v24 = vld [vmem:[#allocation2 + $0x140] sm:$0xff] }
  0xea   :  { %v1366_v27 = vpop.f32.mrf.mxu0 }
  0xeb   :  { %1382 = vpow2.f32 %v1335_v25  ;;  %v225_v29 = vmul.f32 %v1334_v15, %v210_v26  ;;  %v213_v33 = vsub.f32 %v1366_v27, %v1333_v13  ;;  %v1338_v35 = vmul.f32 -1.442695, %v226_v28  ;;  %v314_v25 = vld [vmem:[#allocation2 + $0x118] sm:$0xff]  ;;  %v313_v26 = vld [vmem:[#allocation2 + $0x110] sm:$0xff]  ;;  %v308_v28 = vld [vmem:[#allocation2 + $0xe8] sm:$0xff] }
  0xec   :  { %v182_v30 = vpop.f32.mrf.mxu0 }
  0xed   :  { %v1337_v31 = vmul.f32 -1.442695, %v225_v29  ;;  %v212_v32 = vsub.f32 %v182_v30, %v1333_v13  ;;  %v228_v38 = vmul.f32 %v1334_v15, %v213_v33  ;;  %v307_v29 = vld [vmem:[#allocation2 + $0xe0] sm:$0xff]  ;;  %v302_v30 = vld [vmem:[#allocation2 + $0xb8] sm:$0xff]  ;;  %v296_v33 = vld [vmem:[#allocation2 + $0x88] sm:$0xff] }
  0xee   :  { %v1369_v34 = vpop.f32.mrf.mxu0 }
  0xef   :  { %1384 = vpow2.f32 %v1337_v31  ;;  %v227_v36 = vmul.f32 %v1334_v15, %v212_v32  ;;  %v1340_v41 = vmul.f32 -1.442695, %v228_v38  ;;  %v215_v42 = vsub.f32 %v1369_v34, %v1333_v13  ;;  %v301_v31 = vld [vmem:[#allocation2 + $0xb0] sm:$0xff]  ;;  %v295_v34 = vld [vmem:[#allocation2 + $0x80] sm:$0xff]  ;;  %v284_v38 = vld [vmem:[#allocation2 + $0x28] sm:$0xff] }
  0xf0   :  { %v192_v37 = vpop.f32.mrf.mxu0  ;;  %1386 = vpow2.f32 %v1338_v35  ;;  %v290_v35 = vld [vmem:[#allocation2 + $0x58] sm:$0xff] }
  0xf1   :  { %v214_v39 = vsub.f32 %v192_v37, %v1333_v13  ;;  %v1339_v40 = vmul.f32 -1.442695, %v227_v36  ;;  %v230_v47 = vmul.f32 %v1334_v15, %v215_v42  ;;  %v343_v13 = vld [vmem:[#allocation2 + $0x200] sm:$0xff]  ;;  %v289_v36 = vld [vmem:[#allocation2 + $0x50] sm:$0xff] }
  0xf2   :  { %v968_v42 = vld [vmem:[#allocation5 + $0x1f0] sm:$0xff] }
  0xf3   :  { %v229_v43 = vmul.f32 %v1334_v15, %v214_v39  ;;  %1388 = vpow2.f32 %v1339_v40  ;;  %v1342_v51 = vmul.f32 -1.442695, %v230_v47  ;;  %v283_v39 = vld [vmem:[#allocation2 + $0x20] sm:$0xff]  ;;  %v963_v40 = vld [vmem:[#allocation5 + $0x1c8] sm:$0xff]  ;;  %v961_v47 = vld [vmem:[#allocation5 + $0x1b8] sm:$0xff] }
  0xf4   :  { %1390 = vpow2.f32 %v1340_v41  ;;  %v969_v41 = vld [vmem:[#allocation5 + $0x1f8] sm:$0xff] }
  0xf5   :  { %v1341_v48 = vmul.f32 -1.442695, %v229_v43  ;;  %v965_v43 = vld [vmem:[#allocation5 + $0x1d8] sm:$0xff] }
  0xf6   :  { %v1381_v44 = vpop.eup %1380 }
  0xf7   :  { %v256_v49 = vadd.f32 1.0, %v1381_v44  ;;  %v962_v44 = vld [vmem:[#allocation5 + $0x1c0] sm:$0xff] }
  0xf8   :  { %v1383_v45 = vpop.eup %1382 }
  0xf9   :  { %v255_v46 = vadd.f32 1.0, %v1383_v45  ;;  %v964_v45 = vld [vmem:[#allocation5 + $0x1d0] sm:$0xff] }
  0xfb   :  { %1392 = vrcp.f32 %v255_v46  ;;  %v959_v46 = vld [vmem:[#allocation5 + $0x1a8] sm:$0xff] }
  0xfc   :  { %v1385_v50 = vpop.eup %1384  ;;  %1394 = vpow2.f32 %v1341_v48  ;;  %v958_v48 = vld [vmem:[#allocation5 + $0x1a0] sm:$0xff] }
  0xfd   :  { %1396 = vrcp.f32 %v256_v49  ;;  %v257_v52 = vadd.f32 1.0, %v1385_v50  ;;  %v1387_v53 = vpop.eup %1386  ;;  %v960_v49 = vld [vmem:[#allocation5 + $0x1b0] sm:$0xff]  ;;  %v955_v50 = vld [vmem:[#allocation5 + $0x188] sm:$0xff] }
  0xfe   :  { %1398 = vpow2.f32 %v1342_v51  ;;  %v258_v54 = vadd.f32 1.0, %v1387_v53  ;;  %v957_v51 = vld [vmem:[#allocation5 + $0x198] sm:$0xff]  ;;  %v951_v53 = vld [vmem:[#allocation5 + $0x168] sm:$0xff] }
  0xff   :  { %1400 = vrcp.f32 %v257_v52  ;;  %v954_v52 = vld [vmem:[#allocation5 + $0x180] sm:$0xff] }
 0x100   :  { %v1389_v55 = vpop.eup %1388  ;;  %1402 = vrcp.f32 %v258_v54  ;;  %v956_v54 = vld [vmem:[#allocation5 + $0x190] sm:$0xff] }
 0x101   :  { %v1391_v56 = vpop.eup %1390  ;;  %v259_v57 = vadd.f32 1.0, %v1389_v55  ;;  %v953_v55 = vld [vmem:[#allocation5 + $0x178] sm:$0xff] }
 0x102   :  { %v260_v1 = vadd.f32 1.0, %v1391_v56  ;;  %v950_v56 = vld [vmem:[#allocation5 + $0x160] sm:$0xff] }
 0x103   :  { %1404 = vrcp.f32 %v259_v57  ;;  %v952_v57 = vld [vmem:[#allocation5 + $0x170] sm:$0xff] }
 0x104   :  { %1406 = vrcp.f32 %v260_v1  ;;  %v939_v1 = vld [vmem:[#allocation5 + $0x108] sm:$0xff] }
 0x108   :  { %v1590_v59 = vpop.eup %1392 }
 0x109   :  { %440 = vmatmul.mubr.f32.vlgmr.msra.gmra.mxu1 %v1590_v59  ;;  %553 = vmatmul.mubr.f32.vlgmr.msra.gmra.mxu0 %v1590_v59  ;;  %v1395_v0 = vpop.eup %1394 }
 0x10a   :  { %602 = vmatpush1.msra.mxu1 %v373_v58  ;;  %445 = vmatprep.mubr.f32.mxu1 %v1484_v11  ;;  %v1596_v3 = vpop.eup %1396  ;;  %v261_v8 = vadd.f32 1.0, %v1395_v0  ;;  %v947_v58 = vld [vmem:[#allocation5 + $0x148] sm:$0xff]  ;;  %v942_v0 = vld [vmem:[#allocation5 + $0x120] sm:$0xff] }
 0x10b   :  { %603 = vmatprep.subr.mxu1 %v368_v60  ;;  %558 = vmatprep.mubr.f32.mxu0 %v1484_v11  ;;  %v1399_v7 = vpop.eup %1398  ;;  %v946_v60 = vld [vmem:[#allocation5 + $0x140] sm:$0xff] }
 0x10c   :  { %604 = vmatpush1.msra.mxu1 %v367_v61  ;;  %1035 = vmatpush1.msra.mxu0 %v966_v62  ;;  %v1601_v10 = vpop.eup %1400  ;;  %v262_v15 = vadd.f32 1.0, %v1399_v7  ;;  %1408 = vrcp.f32 %v261_v8  ;;  %v948_v61 = vld [vmem:[#allocation5 + $0x150] sm:$0xff]  ;;  %v943_v62 = vld [vmem:[#allocation5 + $0x128] sm:$0xff]  ;;  %v937_v7 = vld [vmem:[#allocation5 + $0xf8] sm:$0xff] }
 0x10d   :  { %605 = vmatprep.subr.mxu1 %v362_v63  ;;  %446 = vmatmul.mubr.f32.gmra.mxu1 %v1596_v3  ;;  %v1607_v17 = vpop.eup %1402  ;;  %v945_v63 = vld [vmem:[#allocation5 + $0x138] sm:$0xff]  ;;  %v934_v8 = vld [vmem:[#allocation5 + $0xe0] sm:$0xff] }
 0x10e   :  { %559 = vmatmul.mubr.f32.gmra.mxu0 %v1596_v3  ;;  %606 = vmatpush1.msra.mxu1 %v361_v2  ;;  %1410 = vrcp.f32 %v262_v15  ;;  %v944_v2 = vld [vmem:[#allocation5 + $0x130] sm:$0xff] }
 0x10f   :  { %607 = vmatprep.subr.mxu1 %v356_v4  ;;  %451 = vmatprep.mubr.f32.mxu1 %v1484_v11  ;;  %v938_v4 = vld [vmem:[#allocation5 + $0x100] sm:$0xff]  ;;  %v932_v15 = vld [vmem:[#allocation5 + $0xd0] sm:$0xff] }
 0x110   :  { %608 = vmatpush1.msra.mxu1 %v355_v5  ;;  %564 = vmatprep.mubr.f32.mxu0 %v1484_v11  ;;  %v1613_v22 = vpop.eup %1404  ;;  %v940_v5 = vld [vmem:[#allocation5 + $0x110] sm:$0xff] }
 0x111   :  { %609 = vmatprep.subr.mxu1 %v350_v6  ;;  %452 = vmatmul.mubr.f32.gmra.mxu1 %v1601_v10  ;;  %v1619_v27 = vpop.eup %1406  ;;  %v935_v6 = vld [vmem:[#allocation5 + $0xe8] sm:$0xff] }
 0x112   :  { %565 = vmatmul.mubr.f32.gmra.mxu0 %v1601_v10  ;;  %610 = vmatpush1.msra.mxu1 %v349_v9  ;;  %v936_v9 = vld [vmem:[#allocation5 + $0xf0] sm:$0xff] }
 0x113   :  { %611 = vmatprep.subr.mxu1 %v344_v12  ;;  %457 = vmatprep.mubr.f32.mxu1 %v1484_v11  ;;  %v933_v12 = vld [vmem:[#allocation5 + $0xd8] sm:$0xff] }
 0x114   :  { %612 = vmatpush1.msra.mxu1 %v343_v13  ;;  %570 = vmatprep.mubr.f32.mxu0 %v1484_v11  ;;  %v930_v13 = vld [vmem:[#allocation5 + $0xc0] sm:$0xff] }
 0x115   :  { %613 = vmatprep.subr.mxu1 %v338_v14  ;;  %458 = vmatmul.mubr.f32.gmra.mxu1 %v1607_v17  ;;  %v927_v14 = vld [vmem:[#allocation5 + $0xa8] sm:$0xff] }
 0x116   :  { %571 = vmatmul.mubr.f32.gmra.mxu0 %v1607_v17  ;;  %614 = vmatpush1.msra.mxu1 %v337_v16  ;;  %v929_v16 = vld [vmem:[#allocation5 + $0xb8] sm:$0xff] }
 0x117   :  { %615 = vmatprep.subr.mxu1 %v332_v18  ;;  %463 = vmatprep.mubr.f32.mxu1 %v1484_v11  ;;  %v928_v18 = vld [vmem:[#allocation5 + $0xb0] sm:$0xff] }
 0x118   :  { %616 = vmatpush1.msra.mxu1 %v331_v19  ;;  %576 = vmatprep.mubr.f32.mxu0 %v1484_v11  ;;  %v923_v19 = vld [vmem:[#allocation5 + $0x88] sm:$0xff] }
 0x119   :  { %617 = vmatprep.subr.mxu1 %v326_v20  ;;  %464 = vmatmul.mubr.f32.gmra.mxu1 %v1613_v22  ;;  %v1625_v32 = vpop.eup %1408  ;;  %v925_v20 = vld [vmem:[#allocation5 + $0x98] sm:$0xff] }
 0x11a   :  { %577 = vmatmul.mubr.f32.gmra.mxu0 %v1613_v22  ;;  %618 = vmatpush1.msra.mxu1 %v325_v21  ;;  %v922_v21 = vld [vmem:[#allocation5 + $0x80] sm:$0xff] }
 0x11b   :  { %619 = vmatprep.subr.mxu1 %v320_v23  ;;  %469 = vmatprep.mubr.f32.mxu1 %v1484_v11  ;;  %v1631_v37 = vpop.eup %1410  ;;  %v919_v23 = vld [vmem:[#allocation5 + $0x68] sm:$0xff] }
 0x11c   :  { %620 = vmatpush1.msra.mxu1 %v319_v24  ;;  %582 = vmatprep.mubr.f32.mxu0 %v1484_v11  ;;  %v921_v24 = vld [vmem:[#allocation5 + $0x78] sm:$0xff] }
 0x11d   :  { %621 = vmatprep.subr.mxu1 %v314_v25  ;;  %470 = vmatmul.mubr.f32.gmra.mxu1 %v1619_v27  ;;  %v918_v25 = vld [vmem:[#allocation5 + $0x60] sm:$0xff] }
 0x11e   :  { %583 = vmatmul.mubr.f32.gmra.mxu0 %v1619_v27  ;;  %622 = vmatpush1.msra.mxu1 %v313_v26  ;;  %v915_v26 = vld [vmem:[#allocation5 + $0x48] sm:$0xff] }
 0x11f   :  { %623 = vmatprep.subr.mxu1 %v308_v28  ;;  %475 = vmatprep.mubr.f32.mxu1 %v1484_v11  ;;  %v914_v28 = vld [vmem:[#allocation5 + $0x40] sm:$0xff] }
 0x120   :  { %624 = vmatpush1.msra.mxu1 %v307_v29  ;;  %588 = vmatprep.mubr.f32.mxu0 %v1484_v11  ;;  %v916_v29 = vld [vmem:[#allocation5 + $0x50] sm:$0xff] }
 0x121   :  { %625 = vmatprep.subr.mxu1 %v302_v30  ;;  %476 = vmatmul.mubr.f32.gmra.mxu1 %v1625_v32  ;;  %v911_v30 = vld [vmem:[#allocation5 + $0x28] sm:$0xff] }
 0x122   :  { %589 = vmatmul.mubr.f32.gmra.mxu0 %v1625_v32  ;;  %626 = vmatpush1.msra.mxu1 %v301_v31  ;;  %v913_v31 = vld [vmem:[#allocation5 + $0x38] sm:$0xff] }
 0x123   :  { %627 = vmatprep.subr.mxu1 %v296_v33  ;;  %481 = vmatprep.mubr.f32.mxu1 %v1484_v11  ;;  %v912_v33 = vld [vmem:[#allocation5 + $0x30] sm:$0xff] }
 0x124   :  { %628 = vmatpush1.msra.mxu1 %v295_v34  ;;  %594 = vmatprep.mubr.f32.mxu0 %v1484_v11  ;;  %v907_v34 = vld [vmem:[#allocation5 + $0x8] sm:$0xff] }
 0x125   :  { %629 = vmatprep.subr.mxu1 %v290_v35  ;;  %482 = vmatmul.mubr.f32.gmra.mxu1 %v1631_v37  ;;  %v909_v35 = vld [vmem:[#allocation5 + $0x18] sm:$0xff] }
 0x126   :  { %595 = vmatmul.mubr.f32.gmra.mxu0 %v1631_v37  ;;  %630 = vmatpush1.msra.mxu1 %v289_v36  ;;  %v906_v36 = vld [vmem:[#allocation5] sm:$0xff] }
 0x127   :  { %631 = vmatprep.subr.mxu1 %v284_v38  ;;  %665 = vmatprep.mubr.f32.mxu1 %v1484_v11  ;;  %v1031_v38 = vld [vmem:[#allocation5 + $0x3e8] sm:$0xff] }
 0x128   :  { %632 = vmatpush1.msra.mxu1 %v283_v39  ;;  %1036 = vmatprep.subr.mxu0 %v963_v40  ;;  %v1033_v39 = vld [vmem:[#allocation5 + $0x3f8] sm:$0xff]  ;;  %v1030_v40 = vld [vmem:[#allocation5 + $0x3e0] sm:$0xff] }
 0x129   :  { %666 = vmatmul.mubr.f32.vlgmr.msra.gmra.mxu1 %v1590_v59  ;;  %1147 = vmatprep.subr.mxu1 %v969_v41  ;;  %v949_v59 = vld [vmem:[#allocation5 + $0x158] sm:$0xff]  ;;  %v1032_v41 = vld [vmem:[#allocation5 + $0x3f0] sm:$0xff] }
 0x12a   :  { %671 = vmatprep.mubr.f32.mxu1 %v1484_v11  ;;  %1148 = vmatpush1.msra.mxu1 %v968_v42  ;;  %v1027_v42 = vld [vmem:[#allocation5 + $0x3c8] sm:$0xff] }
 0x12b   :  { %1149 = vmatprep.subr.mxu1 %v965_v43  ;;  %1037 = vmatpush1.msra.mxu0 %v962_v44  ;;  %v1029_v43 = vld [vmem:[#allocation5 + $0x3d8] sm:$0xff]  ;;  %v1026_v44 = vld [vmem:[#allocation5 + $0x3c0] sm:$0xff] }
 0x12c   :  { %1150 = vmatpush1.msra.mxu1 %v964_v45  ;;  %1038 = vmatprep.subr.mxu0 %v959_v46  ;;  %v1028_v45 = vld [vmem:[#allocation5 + $0x3d0] sm:$0xff]  ;;  %v1023_v46 = vld [vmem:[#allocation5 + $0x3a8] sm:$0xff] }
 0x12d   :  { %672 = vmatmul.mubr.f32.gmra.mxu1 %v1596_v3  ;;  %1151 = vmatprep.subr.mxu1 %v961_v47  ;;  %v941_v3 = vld [vmem:[#allocation5 + $0x118] sm:$0xff] }
 0x12e   :  { %677 = vmatprep.mubr.f32.mxu1 %v1484_v11  ;;  %1039 = vmatpush1.msra.mxu0 %v958_v48  ;;  %v1025_v47 = vld [vmem:[#allocation5 + $0x3b8] sm:$0xff]  ;;  %v1022_v48 = vld [vmem:[#allocation5 + $0x3a0] sm:$0xff] }
 0x12f   :  { %1152 = vmatpush1.msra.mxu1 %v960_v49  ;;  %1040 = vmatprep.subr.mxu0 %v955_v50  ;;  %v1024_v49 = vld [vmem:[#allocation5 + $0x3b0] sm:$0xff]  ;;  %v1019_v50 = vld [vmem:[#allocation5 + $0x388] sm:$0xff] }
 0x130   :  { %1153 = vmatprep.subr.mxu1 %v957_v51  ;;  %1041 = vmatpush1.msra.mxu0 %v954_v52  ;;  %v1021_v51 = vld [vmem:[#allocation5 + $0x398] sm:$0xff]  ;;  %v1018_v52 = vld [vmem:[#allocation5 + $0x380] sm:$0xff] }
 0x131   :  { %678 = vmatmul.mubr.f32.gmra.mxu1 %v1601_v10  ;;  %1042 = vmatprep.subr.mxu0 %v951_v53  ;;  %v931_v10 = vld [vmem:[#allocation5 + $0xc8] sm:$0xff]  ;;  %v1020_v53 = vld [vmem:[#allocation5 + $0x390] sm:$0xff] }
 0x132   :  { %683 = vmatprep.mubr.f32.mxu1 %v1484_v11  ;;  %1154 = vmatpush1.msra.mxu1 %v956_v54  ;;  %v1015_v54 = vld [vmem:[#allocation5 + $0x368] sm:$0xff] }
 0x133   :  { %1155 = vmatprep.subr.mxu1 %v953_v55  ;;  %1043 = vmatpush1.msra.mxu0 %v950_v56  ;;  %v1017_v55 = vld [vmem:[#allocation5 + $0x378] sm:$0xff]  ;;  %v1014_v56 = vld [vmem:[#allocation5 + $0x360] sm:$0xff] }
 0x134   :  { %1156 = vmatpush1.msra.mxu1 %v952_v57  ;;  %1044 = vmatprep.subr.mxu0 %v947_v58  ;;  %v1016_v57 = vld [vmem:[#allocation5 + $0x370] sm:$0xff]  ;;  %v1011_v58 = vld [vmem:[#allocation5 + $0x348] sm:$0xff] }
 0x135   :  { %684 = vmatmul.mubr.f32.gmra.mxu1 %v1607_v17  ;;  %1157 = vmatprep.subr.mxu1 %v949_v59  ;;  %v926_v17 = vld [vmem:[#allocation5 + $0xa0] sm:$0xff]  ;;  %v1013_v59 = vld [vmem:[#allocation5 + $0x358] sm:$0xff] }
 0x136   :  { %689 = vmatprep.mubr.f32.mxu1 %v1484_v11  ;;  %1045 = vmatpush1.msra.mxu0 %v946_v60  ;;  %v1010_v60 = vld [vmem:[#allocation5 + $0x340] sm:$0xff] }
 0x137   :  { %1158 = vmatpush1.msra.mxu1 %v948_v61  ;;  %1046 = vmatprep.subr.mxu0 %v943_v62  ;;  %v1012_v61 = vld [vmem:[#allocation5 + $0x350] sm:$0xff]  ;;  %v1007_v62 = vld [vmem:[#allocation5 + $0x328] sm:$0xff] }
 0x138   :  { %1159 = vmatprep.subr.mxu1 %v945_v63  ;;  %1047 = vmatpush1.msra.mxu0 %v942_v0  ;;  %v1009_v63 = vld [vmem:[#allocation5 + $0x338] sm:$0xff]  ;;  %v1006_v0 = vld [vmem:[#allocation5 + $0x320] sm:$0xff] }
 0x139   :  { %690 = vmatmul.mubr.f32.gmra.mxu1 %v1613_v22  ;;  %1048 = vmatprep.subr.mxu0 %v939_v1  ;;  %v924_v22 = vld [vmem:[#allocation5 + $0x90] sm:$0xff] }
 0x13a   :  { %695 = vmatprep.mubr.f32.mxu1 %v1484_v11  ;;  %1160 = vmatpush1.msra.mxu1 %v944_v2  ;;  %v1008_v1 = vld [vmem:[#allocation5 + $0x330] sm:$0xff]  ;;  %v1003_v2 = vld [vmem:[#allocation5 + $0x308] sm:$0xff] }
 0x13b   :  { %1161 = vmatprep.subr.mxu1 %v941_v3  ;;  %1049 = vmatpush1.msra.mxu0 %v938_v4  ;;  %v1005_v3 = vld [vmem:[#allocation5 + $0x318] sm:$0xff]  ;;  %v1002_v4 = vld [vmem:[#allocation5 + $0x300] sm:$0xff] }
 0x13c   :  { %1162 = vmatpush1.msra.mxu1 %v940_v5  ;;  %1050 = vmatprep.subr.mxu0 %v935_v6  ;;  %v1004_v5 = vld [vmem:[#allocation5 + $0x310] sm:$0xff]  ;;  %v999_v6 = vld [vmem:[#allocation5 + $0x2e8] sm:$0xff] }
 0x13d   :  { %696 = vmatmul.mubr.f32.gmra.mxu1 %v1619_v27  ;;  %1163 = vmatprep.subr.mxu1 %v937_v7  ;;  %v917_v27 = vld [vmem:[#allocation5 + $0x58] sm:$0xff] }
 0x13e   :  { %701 = vmatprep.mubr.f32.mxu1 %v1484_v11  ;;  %1051 = vmatpush1.msra.mxu0 %v934_v8  ;;  %v1001_v7 = vld [vmem:[#allocation5 + $0x2f8] sm:$0xff]  ;;  %v998_v8 = vld [vmem:[#allocation5 + $0x2e0] sm:$0xff] }
 0x13f   :  { %1164 = vmatpush1.msra.mxu1 %v936_v9  ;;  %1052 = vmatprep.subr.mxu0 %v931_v10  ;;  %v1000_v9 = vld [vmem:[#allocation5 + $0x2f0] sm:$0xff]  ;;  %v995_v10 = vld [vmem:[#allocation5 + $0x2c8] sm:$0xff] }
 0x140   :  { %1165 = vmatprep.subr.mxu1 %v933_v12  ;;  %1053 = vmatpush1.msra.mxu0 %v930_v13  ;;  %v997_v12 = vld [vmem:[#allocation5 + $0x2d8] sm:$0xff]  ;;  %v994_v13 = vld [vmem:[#allocation5 + $0x2c0] sm:$0xff] }
 0x141   :  { %702 = vmatmul.mubr.f32.gmra.mxu1 %v1625_v32  ;;  %1054 = vmatprep.subr.mxu0 %v927_v14  ;;  %v910_v32 = vld [vmem:[#allocation5 + $0x20] sm:$0xff]  ;;  %v996_v14 = vld [vmem:[#allocation5 + $0x2d0] sm:$0xff] }
 0x142   :  { %707 = vmatprep.mubr.f32.mxu1 %v1484_v11  ;;  %1166 = vmatpush1.msra.mxu1 %v932_v15  ;;  %v920_v11 = vld [vmem:[#allocation5 + $0x70] sm:$0xff]  ;;  %v991_v15 = vld [vmem:[#allocation5 + $0x2a8] sm:$0xff] }
 0x143   :  { %1167 = vmatprep.subr.mxu1 %v929_v16  ;;  %1055 = vmatpush1.msra.mxu0 %v926_v17  ;;  %v993_v16 = vld [vmem:[#allocation5 + $0x2b8] sm:$0xff]  ;;  %v990_v17 = vld [vmem:[#allocation5 + $0x2a0] sm:$0xff] }
 0x144   :  { %1168 = vmatpush1.msra.mxu1 %v928_v18  ;;  %1056 = vmatprep.subr.mxu0 %v923_v19  ;;  %v992_v18 = vld [vmem:[#allocation5 + $0x2b0] sm:$0xff]  ;;  %v987_v19 = vld [vmem:[#allocation5 + $0x288] sm:$0xff] }
 0x145   :  { %708 = vmatmul.mubr.f32.gmra.mxu1 %v1631_v37  ;;  %1169 = vmatprep.subr.mxu1 %v925_v20  ;;  %v908_v37 = vld [vmem:[#allocation5 + $0x10] sm:$0xff]  ;;  %v989_v20 = vld [vmem:[#allocation5 + $0x298] sm:$0xff] }
 0x146   :  { %1057 = vmatpush1.msra.mxu0 %v922_v21  ;;  %1170 = vmatpush1.msra.mxu1 %v924_v22  ;;  %v986_v21 = vld [vmem:[#allocation5 + $0x280] sm:$0xff]  ;;  %v988_v22 = vld [vmem:[#allocation5 + $0x290] sm:$0xff] }
 0x147   :  { %1058 = vmatprep.subr.mxu0 %v919_v23  ;;  %1171 = vmatprep.subr.mxu1 %v921_v24  ;;  %v983_v23 = vld [vmem:[#allocation5 + $0x268] sm:$0xff]  ;;  %v985_v24 = vld [vmem:[#allocation5 + $0x278] sm:$0xff] }
 0x148   :  { %1059 = vmatpush1.msra.mxu0 %v918_v25  ;;  %1172 = vmatpush1.msra.mxu1 %v920_v11  ;;  %v982_v25 = vld [vmem:[#allocation5 + $0x260] sm:$0xff]  ;;  %v984_v11 = vld [vmem:[#allocation5 + $0x270] sm:$0xff] }
 0x149   :  { %1060 = vmatprep.subr.mxu0 %v915_v26  ;;  %1173 = vmatprep.subr.mxu1 %v917_v27  ;;  %v979_v26 = vld [vmem:[#allocation5 + $0x248] sm:$0xff]  ;;  %v981_v27 = vld [vmem:[#allocation5 + $0x258] sm:$0xff] }
 0x14a   :  { %1061 = vmatpush1.msra.mxu0 %v914_v28  ;;  %1174 = vmatpush1.msra.mxu1 %v916_v29  ;;  %v978_v28 = vld [vmem:[#allocation5 + $0x240] sm:$0xff]  ;;  %v980_v29 = vld [vmem:[#allocation5 + $0x250] sm:$0xff] }
 0x14b   :  { %1062 = vmatprep.subr.mxu0 %v911_v30  ;;  %1175 = vmatprep.subr.mxu1 %v913_v31  ;;  %v975_v30 = vld [vmem:[#allocation5 + $0x228] sm:$0xff]  ;;  %v977_v31 = vld [vmem:[#allocation5 + $0x238] sm:$0xff] }
 0x14c   :  { %1063 = vmatpush1.msra.mxu0 %v910_v32  ;;  %1176 = vmatpush1.msra.mxu1 %v912_v33  ;;  %v974_v32 = vld [vmem:[#allocation5 + $0x220] sm:$0xff]  ;;  %v976_v33 = vld [vmem:[#allocation5 + $0x230] sm:$0xff] }
 0x14d   :  { %1064 = vmatprep.subr.mxu0 %v907_v34  ;;  %1177 = vmatprep.subr.mxu1 %v909_v35  ;;  %v971_v34 = vld [vmem:[#allocation5 + $0x208] sm:$0xff]  ;;  %v973_v35 = vld [vmem:[#allocation5 + $0x218] sm:$0xff] }
 0x14e   :  { %1065 = vmatpush1.msra.mxu0 %v906_v36  ;;  %1178 = vmatpush1.msra.mxu1 %v908_v37  ;;  %v970_v36 = vld [vmem:[#allocation5 + $0x200] sm:$0xff]  ;;  %v972_v37 = vld [vmem:[#allocation5 + $0x210] sm:$0xff] }
 0x14f   :  { %1066 = vmatprep.subr.mxu0 %v1031_v38  ;;  %1179 = vmatprep.subr.mxu1 %v1033_v39 }
 0x150   :  { %1067 = vmatpush2.msra.mxu0 %v1030_v40  ;;  %1180 = vmatpush2.msra.mxu1 %v1032_v41 }
 0x151   :  { %1068 = vmatprep.subr.mxu0 %v1027_v42  ;;  %1181 = vmatprep.subr.mxu1 %v1029_v43 }
 0x152   :  { %1069 = vmatpush2.msra.mxu0 %v1026_v44  ;;  %1182 = vmatpush2.msra.mxu1 %v1028_v45 }
 0x153   :  { %1070 = vmatprep.subr.mxu0 %v1023_v46  ;;  %1183 = vmatprep.subr.mxu1 %v1025_v47  ;;  %v716_v47 = vlaneseq }
 0x154   :  { %1071 = vmatpush2.msra.mxu0 %v1022_v48  ;;  %1184 = vmatpush2.msra.mxu1 %v1024_v49 }
 0x155   :  { %1072 = vmatprep.subr.mxu0 %v1019_v50  ;;  %1185 = vmatprep.subr.mxu1 %v1021_v51  ;;  %v717_v51 = vshrl.u32 %v716_v47, 7 }
 0x156   :  { %1073 = vmatpush2.msra.mxu0 %v1018_v52  ;;  %1186 = vmatpush2.msra.mxu1 %v1020_v53 }
 0x157   :  { %1074 = vmatprep.subr.mxu0 %v1015_v54  ;;  %1187 = vmatprep.subr.mxu1 %v1017_v55  ;;  %v718_v55 = vsub.s32 0, %v717_v51 }
 0x158   :  { %1075 = vmatpush2.msra.mxu0 %v1014_v56  ;;  %1188 = vmatpush2.msra.mxu1 %v1016_v57  ;;  %v726_v56 = vsub.s32 2, %v717_v51  ;;  %v722_v57 = vsub.s32 1, %v717_v51 }
 0x159   :  { %1076 = vmatprep.subr.mxu0 %v1011_v58  ;;  %1189 = vmatprep.subr.mxu1 %v1013_v59  ;;  %v730_v58 = vsub.s32 3, %v717_v51 }
 0x15a   :  { %1077 = vmatpush2.msra.mxu0 %v1010_v60  ;;  %1190 = vmatpush2.msra.mxu1 %v1012_v61  ;;  %v714_v61 = vld [vmem:[%s1832_s5] sm:$0x3f] }
 0x15b   :  { %1078 = vmatprep.subr.mxu0 %v1007_v62  ;;  %1191 = vmatprep.subr.mxu1 %v1009_v63  ;;  %v794_v63 = vld [vmem:[%s1833_s6] sm:$0x3f] }
 0x15c   :  { %1079 = vmatpush2.msra.mxu0 %v1006_v0  ;;  %1192 = vmatpush2.msra.mxu1 %v1008_v1  ;;  %v1666_v0 = vrot.slane %v714_v61, %v718_v55  ;;  %v1668_v1 = vrot.slane %v714_v61, %v726_v56 }
 0x15d   :  { %1080 = vmatprep.subr.mxu0 %v1003_v2  ;;  %1193 = vmatprep.subr.mxu1 %v1005_v3  ;;  %v1670_v2 = vrot.slane %v714_v61, %v722_v57  ;;  %v1672_v3 = vrot.slane %v714_v61, %v730_v58 }
 0x15e   :  { %1081 = vmatpush2.msra.mxu0 %v1002_v4  ;;  %1194 = vmatpush2.msra.mxu1 %v1004_v5 }
 0x15f   :  { %1082 = vmatprep.subr.mxu0 %v999_v6  ;;  %1195 = vmatprep.subr.mxu1 %v1001_v7  ;;  %v1676_v6 = vrot.slane %v794_v63, %v718_v55 }
 0x160   :  { %1083 = vmatpush2.msra.mxu0 %v998_v8  ;;  %1196 = vmatpush2.msra.mxu1 %v1000_v9  ;;  %v1680_v8 = vrot.slane %v794_v63, %v726_v56  ;;  %v1682_v9 = vrot.slane %v794_v63, %v722_v57 }
 0x161   :  { %1084 = vmatprep.subr.mxu0 %v995_v10  ;;  %1197 = vmatprep.subr.mxu1 %v997_v12  ;;  %v1684_v10 = vrot.slane %v794_v63, %v730_v58  ;;  %v734_v12 = vsub.s32 4, %v717_v51 }
 0x162   :  { %1085 = vmatpush2.msra.mxu0 %v994_v13  ;;  %1198 = vmatpush2.msra.mxu1 %v996_v14 }
 0x163   :  { %1086 = vmatprep.subr.mxu0 %v991_v15  ;;  %1199 = vmatprep.subr.mxu1 %v993_v16 }
 0x164   :  { %1087 = vmatpush2.msra.mxu0 %v990_v17  ;;  %1200 = vmatpush2.msra.mxu1 %v992_v18 }
 0x165   :  { %1088 = vmatprep.subr.mxu0 %v987_v19  ;;  %1201 = vmatprep.subr.mxu1 %v989_v20  ;;  %v738_v19 = vsub.s32 5, %v717_v51 }
 0x166   :  { %1089 = vmatpush2.msra.mxu0 %v986_v21  ;;  %1202 = vmatpush2.msra.mxu1 %v988_v22  ;;  %v1696_v21 = vrot.slane %v714_v61, %v734_v12 }
 0x167   :  { %1090 = vmatprep.subr.mxu0 %v983_v23  ;;  %1203 = vmatprep.subr.mxu1 %v985_v24 }
 0x168   :  { %1091 = vmatpush2.msra.mxu0 %v982_v25  ;;  %1204 = vmatpush2.msra.mxu1 %v984_v11 }
 0x169   :  { %1092 = vmatprep.subr.mxu0 %v979_v26  ;;  %1205 = vmatprep.subr.mxu1 %v981_v27 }
 0x16a   :  { %1093 = vmatpush2.msra.mxu0 %v978_v28  ;;  %1206 = vmatpush2.msra.mxu1 %v980_v29 }
 0x16b   :  { %1094 = vmatprep.subr.mxu0 %v975_v30  ;;  %1207 = vmatprep.subr.mxu1 %v977_v31  ;;  %v1709_v30 = vrot.slane %v714_v61, %v738_v19 }
 0x16c   :  { %1095 = vmatpush2.msra.mxu0 %v974_v32  ;;  %1208 = vmatpush2.msra.mxu1 %v976_v33 }
 0x16d   :  { %1096 = vmatprep.subr.mxu0 %v971_v34  ;;  %1209 = vmatprep.subr.mxu1 %v973_v35  ;;  %v1714_v35 = vrot.slane %v794_v63, %v734_v12 }
 0x16e   :  { %1097 = vmatpush2.msra.mxu0 %v970_v36  ;;  %1210 = vmatpush2.msra.mxu1 %v972_v37 }
 0x1c9   :  { %v441_v38 = vpop.f32.mrf.mxu1  ;;  %v554_v39 = vpop.f32.mrf.mxu0 }
 0x1ca   :  { %v746_v13 = vmul.f32 %v1666_v0, %v441_v38  ;;  %v748_v14 = vmul.f32 %v1668_v1, %v554_v39  ;;  %v1719_v39 = vrot.slane %v794_v63, %v738_v19 }
 0x1cb   :  { %v443_v40 = vpop.f32.mrf.mxu1  ;;  %v556_v41 = vpop.f32.mrf.mxu0 }
 0x1cc   :  { %v747_v15 = vmul.f32 %v1670_v2, %v443_v40  ;;  %v749_v16 = vmul.f32 %v1672_v3, %v556_v41  ;;  %v826_v22 = vadd.f32 %v1676_v6, %v746_v13  ;;  %v828_v23 = vadd.f32 %v1680_v8, %v748_v14 }
 0x1cd   :  { %v447_v42 = vpop.f32.mrf.mxu1 }
 0x1ce   :  { %v560_v43 = vpop.f32.mrf.mxu0  ;;  %v827_v24 = vadd.f32 %v1682_v9, %v747_v15  ;;  %v829_v25 = vadd.f32 %v1684_v10, %v749_v16  ;;  %v752_v27 = vmul.f32 %v1666_v0, %v447_v42  ;;  %v874_v40 = vmul.f32 %v828_v23, %v826_v22 }
 0x1cf   :  { %v449_v44 = vpop.f32.mrf.mxu1  ;;  %v754_v28 = vmul.f32 %v1668_v1, %v560_v43 }
 0x1d0   :  { %v562_v45 = vpop.f32.mrf.mxu0  ;;  %v753_v29 = vmul.f32 %v1670_v2, %v449_v44  ;;  %v875_v41 = vmul.f32 %v829_v25, %v827_v24 }
 0x1d1   :  { %v453_v46 = vpop.f32.mrf.mxu1  ;;  %v755_v31 = vmul.f32 %v1672_v3, %v562_v45  ;;  %v834_v47 = vadd.f32 %v1680_v8, %v754_v28 }
 0x1d2   :  { %v566_v48 = vpop.f32.mrf.mxu0  ;;  %v758_v32 = vmul.f32 %v1666_v0, %v453_v46  ;;  %v832_v46 = vadd.f32 %v1676_v6, %v752_v27 }
 0x1d3   :  { %v455_v49 = vpop.f32.mrf.mxu1  ;;  %v760_v33 = vmul.f32 %v1668_v1, %v566_v48  ;;  %v833_v48 = vadd.f32 %v1682_v9, %v753_v29  ;;  %v835_v51 = vadd.f32 %v1684_v10, %v755_v31 }
 0x1d4   :  { %v568_v52 = vpop.f32.mrf.mxu0  ;;  %v759_v36 = vmul.f32 %v1670_v2, %v455_v49  ;;  %v876_v19 = vmul.f32 %v834_v47, %v832_v46 }
 0x1d5   :  { %v459_v50 = vpop.f32.mrf.mxu1  ;;  %v761_v37 = vmul.f32 %v1672_v3, %v568_v52  ;;  %v838_v52 = vadd.f32 %v1676_v6, %v758_v32  ;;  %v840_v55 = vadd.f32 %v1680_v8, %v760_v33  ;;  %v877_v25 = vmul.f32 %v835_v51, %v833_v48 }
 0x1d6   :  { %v572_v59 = vpop.f32.mrf.mxu0  ;;  %v764_v42 = vmul.f32 %v1666_v0, %v459_v50  ;;  %v839_v57 = vadd.f32 %v1682_v9, %v759_v36 }
 0x1d7   :  { %v1652_v53 = vpop.f32.mrf.mxu1  ;;  %v766_v43 = vmul.f32 %v1668_v1, %v572_v59  ;;  %v841_v58 = vadd.f32 %v1684_v10, %v761_v37  ;;  %v878_v27 = vmul.f32 %v840_v55, %v838_v52 }
 0x1d8   :  { %v574_v4 = vpop.f32.mrf.mxu0  ;;  %v844_v63 = vadd.f32 %v1676_v6, %v764_v42  ;;  %v765_v13 = vmul.f32 %v1670_v2, %v1652_v53 }
 0x1d9   :  { %v1654_v54 = vpop.f32.mrf.mxu1  ;;  %v846_v12 = vadd.f32 %v1680_v8, %v766_v43  ;;  %v767_v14 = vmul.f32 %v1672_v3, %v574_v4  ;;  %v879_v32 = vmul.f32 %v841_v58, %v839_v57 }
 0x1da   :  { %v1690_v17 = vpop.f32.mrf.mxu0  ;;  %v770_v22 = vmul.f32 %v1666_v0, %v1654_v54 }
 0x1db   :  { %v1656_v60 = vpop.f32.mrf.mxu1  ;;  %v880_v33 = vmul.f32 %v846_v12, %v844_v63  ;;  %v847_v54 = vadd.f32 %v1684_v10, %v767_v14 }
 0x1dc   :  { %v1702_v11 = vpop.f32.mrf.mxu0  ;;  %v771_v43 = vmul.f32 %v1670_v2, %v1656_v60 }
 0x1dd   :  { %v1661_v62 = vpop.f32.mrf.mxu1 }
 0x1de   :  { %v584_v44 = vpop.f32.mrf.mxu0 }
 0x1df   :  { %v1674_v5 = vpop.f32.mrf.mxu1  ;;  %v778_v55 = vmul.f32 %v1668_v1, %v584_v44 }
 0x1e0   :  { %v586_v15 = vpop.f32.mrf.mxu0  ;;  %v777_v60 = vmul.f32 %v1670_v2, %v1674_v5 }
 0x1e1   :  { %v1678_v7 = vpop.f32.mrf.mxu1 }
 0x1e2   :  { %v590_v36 = vpop.f32.mrf.mxu0 }
 0x1e3   :  { %v1692_v18 = vpop.f32.mrf.mxu1 }
 0x1e5   :  { %v1694_v20 = vpop.f32.mrf.mxu1 }
 0x1e7   :  { %v1704_v26 = vpop.f32.mrf.mxu1 }
 0x1e9   :  { %v667_v34 = vpop.f32.mrf.mxu1 }
 0x1ea   :  { %v750_v38 = vmul.f32 %v1696_v21, %v667_v34  ;;  %v845_v34 = vadd.f32 %v1682_v9, %v765_v13 }
 0x1eb   :  { %v669_v45 = vpop.f32.mrf.mxu1 }
 0x1ec   :  { %v751_v49 = vmul.f32 %v1709_v30, %v669_v45  ;;  %v830_v50 = vadd.f32 %v1714_v35, %v750_v38  ;;  %v850_v38 = vadd.f32 %v1676_v6, %v770_v22  ;;  %v773_v45 = vmul.f32 %v1672_v3, %v1702_v11  ;;  %v592_v11 = vpop.f32.mrf.mxu0 }
 0x1ed   :  { %v673_v56 = vpop.f32.mrf.mxu1  ;;  %v881_v52 = vmul.f32 %v847_v54, %v845_v34 }
 0x1ee   :  { %v831_v59 = vadd.f32 %v1719_v39, %v751_v49  ;;  %v756_v61 = vmul.f32 %v1696_v21, %v673_v56  ;;  %v890_v28 = vmul.f32 %v874_v40, %v830_v50  ;;  %v772_v40 = vmul.f32 %v1668_v1, %v1690_v17  ;;  %v596_v22 = vpop.f32.mrf.mxu0 }
 0x1ef   :  { %v675_v16 = vpop.f32.mrf.mxu1  ;;  %v776_v49 = vmul.f32 %v1666_v0, %v1661_v62  ;;  %v779_v62 = vmul.f32 %v1672_v3, %v586_v15  ;;  %v858_v15 = vadd.f32 %v1680_v8, %v778_v55 }
 0x1f0   :  { %v757_v23 = vmul.f32 %v1709_v30, %v675_v16  ;;  %v891_v24 = vmul.f32 %v875_v41, %v831_v59  ;;  %v836_v29 = vadd.f32 %v1714_v35, %v756_v61  ;;  %v852_v56 = vadd.f32 %v1680_v8, %v772_v40 }
 0x1f1   :  { %v679_v31 = vpop.f32.mrf.mxu1  ;;  %v851_v59 = vadd.f32 %v1682_v9, %v771_v43  ;;  %v853_v61 = vadd.f32 %v1684_v10, %v773_v45  ;;  %v856_v5 = vadd.f32 %v1676_v6, %v776_v49  ;;  %v857_v16 = vadd.f32 %v1682_v9, %v777_v60 }
 0x1f2   :  { %v837_v53 = vadd.f32 %v1719_v39, %v757_v23  ;;  %v762_v4 = vmul.f32 %v1696_v21, %v679_v31  ;;  %1098 = vmatprep.mubr.f32.mxu0 %v891_v24  ;;  %1211 = vmatprep.mubr.f32.mxu1 %v891_v24  ;;  %v892_v48 = vmul.f32 %v876_v19, %v836_v29 }
 0x1f3   :  { %v681_v37 = vpop.f32.mrf.mxu1  ;;  %1099 = vmatmul.mubr.f32.vlgmr.msra.gmra.mxu0 %v890_v28  ;;  %1212 = vmatmul.mubr.f32.vlgmr.msra.gmra.mxu1 %v890_v28  ;;  %v782_v19 = vmul.f32 %v1666_v0, %v1678_v7  ;;  %v859_v24 = vadd.f32 %v1684_v10, %v779_v62  ;;  %v882_v29 = vmul.f32 %v852_v56, %v850_v38 }
 0x1f4   :  { %v763_v41 = vmul.f32 %v1709_v30, %v681_v37  ;;  %v893_v42 = vmul.f32 %v877_v25, %v837_v53  ;;  %v842_v46 = vadd.f32 %v1714_v35, %v762_v4  ;;  %v783_v25 = vmul.f32 %v1670_v2, %v1692_v18 }
 0x1f5   :  { %v685_v47 = vpop.f32.mrf.mxu1  ;;  %v785_v31 = vmul.f32 %v1672_v3, %v592_v11  ;;  %v883_v7 = vmul.f32 %v853_v61, %v851_v59  ;;  %v884_v37 = vmul.f32 %v858_v15, %v856_v5  ;;  %v862_v18 = vadd.f32 %v1676_v6, %v782_v19 }
 0x1f6   :  { %v843_v51 = vadd.f32 %v1719_v39, %v763_v41  ;;  %v768_v17 = vmul.f32 %v1696_v21, %v685_v47  ;;  %1104 = vmatprep.mubr.f32.mxu0 %v893_v42  ;;  %1217 = vmatprep.mubr.f32.mxu1 %v893_v42  ;;  %v894_v12 = vmul.f32 %v878_v27, %v842_v46  ;;  %v598_v41 = vpop.f32.mrf.mxu0 }
 0x1f7   :  { %v687_v50 = vpop.f32.mrf.mxu1  ;;  %1105 = vmatmul.mubr.f32.gmra.mxu0 %v892_v48  ;;  %1218 = vmatmul.mubr.f32.gmra.mxu1 %v892_v48  ;;  %v784_v40 = vmul.f32 %v1668_v1, %v590_v36  ;;  %v885_v42 = vmul.f32 %v859_v24, %v857_v16  ;;  %v863_v43 = vadd.f32 %v1682_v9, %v783_v25 }
 0x1f8   :  { %v769_v57 = vmul.f32 %v1709_v30, %v687_v50  ;;  %v895_v58 = vmul.f32 %v879_v32, %v843_v51  ;;  %v848_v44 = vadd.f32 %v1714_v35, %v768_v17  ;;  %v865_v46 = vadd.f32 %v1684_v10, %v785_v31 }
 0x1f9   :  { %v691_v63 = vpop.f32.mrf.mxu1  ;;  %v789_v47 = vmul.f32 %v1670_v2, %v1704_v26  ;;  %v791_v36 = vmul.f32 %v1672_v3, %v598_v41  ;;  %v864_v55 = vadd.f32 %v1680_v8, %v784_v40  ;;  %v788_v60 = vmul.f32 %v1666_v0, %v1694_v20 }
 0x1fa   :  { %v849_v13 = vadd.f32 %v1719_v39, %v769_v57  ;;  %v774_v14 = vmul.f32 %v1696_v21, %v691_v63  ;;  %1110 = vmatprep.mubr.f32.mxu0 %v895_v58  ;;  %1223 = vmatprep.mubr.f32.mxu1 %v895_v58  ;;  %v896_v4 = vmul.f32 %v880_v33, %v848_v44 }
 0x1fb   :  { %v693_v23 = vpop.f32.mrf.mxu1  ;;  %1111 = vmatmul.mubr.f32.gmra.mxu0 %v894_v12  ;;  %1224 = vmatmul.mubr.f32.gmra.mxu1 %v894_v12  ;;  %v790_v11 = vmul.f32 %v1668_v1, %v596_v22  ;;  %v887_v3 = vmul.f32 %v865_v46, %v863_v43  ;;  %v869_v56 = vadd.f32 %v1682_v9, %v789_v47 }
 0x1fc   :  { %v775_v27 = vmul.f32 %v1709_v30, %v693_v23  ;;  %v897_v28 = vmul.f32 %v881_v52, %v849_v13  ;;  %v854_v32 = vadd.f32 %v1714_v35, %v774_v14  ;;  %v871_v59 = vadd.f32 %v1684_v10, %v791_v36 }
 0x1fd   :  { %v697_v53 = vpop.f32.mrf.mxu1  ;;  %v886_v1 = vmul.f32 %v864_v55, %v862_v18  ;;  %v868_v20 = vadd.f32 %v1676_v6, %v788_v60  ;;  %v870_v44 = vadd.f32 %v1680_v8, %v790_v11 }
 0x1fe   :  { %v855_v34 = vadd.f32 %v1719_v39, %v775_v27  ;;  %v780_v54 = vmul.f32 %v1696_v21, %v697_v53  ;;  %1116 = vmatprep.mubr.f32.mxu0 %v897_v28  ;;  %1229 = vmatprep.mubr.f32.mxu1 %v897_v28  ;;  %v898_v51 = vmul.f32 %v882_v29, %v854_v32 }
 0x1ff   :  { %v699_v38 = vpop.f32.mrf.mxu1  ;;  %1117 = vmatmul.mubr.f32.gmra.mxu0 %v896_v4  ;;  %1230 = vmatmul.mubr.f32.gmra.mxu1 %v896_v4  ;;  %v889_v13 = vmul.f32 %v871_v59, %v869_v56 }
 0x200   :  { %v781_v33 = vmul.f32 %v1709_v30, %v699_v38  ;;  %v899_v45 = vmul.f32 %v883_v7, %v855_v34  ;;  %v860_v48 = vadd.f32 %v1714_v35, %v780_v54 }
 0x201   :  { %v703_v49 = vpop.f32.mrf.mxu1 }
 0x202   :  { %v861_v17 = vadd.f32 %v1719_v39, %v781_v33  ;;  %v786_v52 = vmul.f32 %v1696_v21, %v703_v49  ;;  %1122 = vmatprep.mubr.f32.mxu0 %v899_v45  ;;  %1235 = vmatprep.mubr.f32.mxu1 %v899_v45  ;;  %v900_v58 = vmul.f32 %v884_v37, %v860_v48 }
 0x203   :  { %v705_v2 = vpop.f32.mrf.mxu1  ;;  %1123 = vmatmul.mubr.f32.gmra.mxu0 %v898_v51  ;;  %1236 = vmatmul.mubr.f32.gmra.mxu1 %v898_v51 }
 0x204   :  { %v787_v26 = vmul.f32 %v1709_v30, %v705_v2  ;;  %v901_v50 = vmul.f32 %v885_v42, %v861_v17  ;;  %v866_v62 = vadd.f32 %v1714_v35, %v786_v52 }
 0x205   :  { %v709_v57 = vpop.f32.mrf.mxu1 }
 0x206   :  { %v867_v61 = vadd.f32 %v1719_v39, %v787_v26  ;;  %v792_v0 = vmul.f32 %v1696_v21, %v709_v57  ;;  %1128 = vmatprep.mubr.f32.mxu0 %v901_v50  ;;  %1241 = vmatprep.mubr.f32.mxu1 %v901_v50  ;;  %v902_v10 = vmul.f32 %v886_v1, %v866_v62 }
 0x207   :  { %v711_v63 = vpop.f32.mrf.mxu1  ;;  %1129 = vmatmul.mubr.f32.gmra.mxu0 %v900_v58  ;;  %1242 = vmatmul.mubr.f32.gmra.mxu1 %v900_v58  ;;  %v888_v21 = vmul.f32 %v870_v44, %v868_v20 }
 0x208   :  { %v793_v9 = vmul.f32 %v1709_v30, %v711_v63  ;;  %v903_v12 = vmul.f32 %v887_v3, %v867_v61  ;;  %v872_v5 = vadd.f32 %v1714_v35, %v792_v0 }
 0x20a   :  { %v873_v14 = vadd.f32 %v1719_v39, %v793_v9  ;;  %1134 = vmatprep.mubr.f32.mxu0 %v903_v12  ;;  %1247 = vmatprep.mubr.f32.mxu1 %v903_v12  ;;  %v904_v15 = vmul.f32 %v888_v21, %v872_v5  ;;  %v1814_v39 = vld [vmem:[%s1835_s8] ss:$0 sm:$0xff]  ;;  %s1485_s8 = smov [#allocation7]  }
 0x20b   :  { %1135 = vmatmul.mubr.f32.gmra.mxu0 %v902_v10  ;;  %1248 = vmatmul.mubr.f32.gmra.mxu1 %v902_v10  ;;  %s1312_s23 = sshll.u32 %s1485_s8, 4  ;;  %s1313_s23 = int_to_ptr.vmem [resolvable:$true] %s1312_s23 }
 0x20c   :  { %v905_v6 = vmul.f32 %v889_v13, %v873_v14  ;;  %s1452_s24 = scalar_lea.vmem %s1313_s23, 1024  ;;  %p1457_p11 = scmp.lt.s32.totalorder %s1313_s23, %s1313_s23 }
 0x20d   :  { %p1453_p10 = scmp.ne.s32.totalorder %s1313_s23, %s1452_s24  ;;  %p1458_p12 = scmp.lt.s32.totalorder %s1452_s24, %s1452_s24 }
 0x20e   :  { %1140 = vmatprep.mubr.f32.mxu0 %v905_v6  ;;  %1253 = vmatprep.mubr.f32.mxu1 %v905_v6 }
 0x20f   :  { %1141 = vmatmul.mubr.f32.gmra.mxu0 %v904_v15  ;;  %1254 = vmatmul.mubr.f32.gmra.mxu1 %v904_v15  ;;  %p1459_p13 = por %p1458_p12, %p1457_p11 }
 0x211   :  { %p1460_p0 = pnand %p1459_p13, %p1453_p10 }
 0x2b3   :  { %v1100_v8 = vpop.f32.mrf.mxu0  ;;  %v1213_v30 = vpop.f32.mrf.mxu1 }
 0x2b5   :  { %v1102_v16 = vpop.f32.mrf.mxu0  ;;  %v1215_v19 = vpop.f32.mrf.mxu1 }
 0x2b6   :  { %v1260_v35 = vmax.f32 %v1100_v8, %v1102_v16  ;;  %v1268_v22 = vmax.f32 %v1213_v30, %v1215_v19 }
 0x2b7   :  { %v1106_v23 = vpop.f32.mrf.mxu0  ;;  %v1219_v24 = vpop.f32.mrf.mxu1 }
 0x2b8   :  { %v1276_v25 = vmax.f32 %v1260_v35, %v1268_v22 }
 0x2b9   :  { %v1108_v27 = vpop.f32.mrf.mxu0  ;;  %v1221_v28 = vpop.f32.mrf.mxu1 }
 0x2ba   :  { %v1291_v29 = vmul.f32 %v1814_v39, %v1276_v25  ;;  %v1261_v31 = vmax.f32 %v1106_v23, %v1108_v27  ;;  %v1269_v32 = vmax.f32 %v1219_v24, %v1221_v28 }
 0x2bb   :  { %v1112_v53 = vpop.f32.mrf.mxu0  ;;  %v1225_v4 = vpop.f32.mrf.mxu1 }
 0x2bc   :  { %1299 = vst [vmem:[#allocation7] sm:$0xff] %v1291_v29  ;;  %v1277_v7 = vmax.f32 %v1261_v31, %v1269_v32 }
 0x2bd   :  { %v1114_v34 = vpop.f32.mrf.mxu0  ;;  %v1227_v54 = vpop.f32.mrf.mxu1 }
 0x2be   :  { %v1292_v37 = vmul.f32 %v1814_v39, %v1277_v7  ;;  %v1262_v18 = vmax.f32 %v1112_v53, %v1114_v34  ;;  %v1270_v40 = vmax.f32 %v1225_v4, %v1227_v54 }
 0x2bf   :  { %v1118_v41 = vpop.f32.mrf.mxu0  ;;  %v1231_v38 = vpop.f32.mrf.mxu1 }
 0x2c0   :  { %1300 = vst [vmem:[#allocation7 + $0x8] sm:$0xff] %v1292_v37  ;;  %v1278_v42 = vmax.f32 %v1262_v18, %v1270_v40 }
 0x2c1   :  { %v1120_v43 = vpop.f32.mrf.mxu0  ;;  %v1233_v33 = vpop.f32.mrf.mxu1 }
 0x2c2   :  { %v1293_v45 = vmul.f32 %v1814_v39, %v1278_v42  ;;  %v1263_v46 = vmax.f32 %v1118_v41, %v1120_v43  ;;  %v1271_v47 = vmax.f32 %v1231_v38, %v1233_v33 }
 0x2c3   :  { %v1124_v48 = vpop.f32.mrf.mxu0  ;;  %v1237_v49 = vpop.f32.mrf.mxu1 }
 0x2c4   :  { %1301 = vst [vmem:[#allocation7 + $0x10] sm:$0xff] %v1293_v45  ;;  %v1279_v51 = vmax.f32 %v1263_v46, %v1271_v47 }
 0x2c5   :  { %v1126_v36 = vpop.f32.mrf.mxu0  ;;  %v1239_v17 = vpop.f32.mrf.mxu1 }
 0x2c6   :  { %v1294_v52 = vmul.f32 %v1814_v39, %v1279_v51  ;;  %v1264_v55 = vmax.f32 %v1124_v48, %v1126_v36  ;;  %v1272_v60 = vmax.f32 %v1237_v49, %v1239_v17 }
 0x2c7   :  { %v1130_v11 = vpop.f32.mrf.mxu0  ;;  %v1243_v2 = vpop.f32.mrf.mxu1 }
 0x2c8   :  { %1302 = vst [vmem:[#allocation7 + $0x18] sm:$0xff] %v1294_v52  ;;  %v1280_v26 = vmax.f32 %v1264_v55, %v1272_v60 }
 0x2c9   :  { %v1132_v50 = vpop.f32.mrf.mxu0  ;;  %v1245_v3 = vpop.f32.mrf.mxu1 }
 0x2ca   :  { %v1295_v56 = vmul.f32 %v1814_v39, %v1280_v26  ;;  %v1265_v62 = vmax.f32 %v1130_v11, %v1132_v50  ;;  %v1273_v57 = vmax.f32 %v1243_v2, %v1245_v3 }
 0x2cb   :  { %v1136_v58 = vpop.f32.mrf.mxu0  ;;  %v1249_v59 = vpop.f32.mrf.mxu1 }
 0x2cc   :  { %1303 = vst [vmem:[#allocation7 + $0x20] sm:$0xff] %v1295_v56  ;;  %v1281_v61 = vmax.f32 %v1265_v62, %v1273_v57 }
 0x2cd   :  { %v1138_v0 = vpop.f32.mrf.mxu0  ;;  %v1251_v1 = vpop.f32.mrf.mxu1 }
 0x2ce   :  { %v1296_v20 = vmul.f32 %v1814_v39, %v1281_v61  ;;  %v1266_v44 = vmax.f32 %v1136_v58, %v1138_v0  ;;  %v1274_v63 = vmax.f32 %v1249_v59, %v1251_v1 }
 0x2cf   :  { %v1142_v9 = vpop.f32.mrf.mxu0  ;;  %v1255_v12 = vpop.f32.mrf.mxu1 }
 0x2d0   :  { %1304 = vst [vmem:[#allocation7 + $0x28] sm:$0xff] %v1296_v20  ;;  %v1282_v5 = vmax.f32 %v1266_v44, %v1274_v63 }
 0x2d1   :  { %v1144_v10 = vpop.f32.mrf.mxu0  ;;  %v1257_v13 = vpop.f32.mrf.mxu1 }
 0x2d2   :  { %v1297_v14 = vmul.f32 %v1814_v39, %v1282_v5  ;;  %v1267_v21 = vmax.f32 %v1142_v9, %v1144_v10  ;;  %v1275_v6 = vmax.f32 %v1255_v12, %v1257_v13 }
 0x2d4   :  { %1305 = vst [vmem:[#allocation7 + $0x30] sm:$0xff] %v1297_v14  ;;  %v1283_v15 = vmax.f32 %v1267_v21, %v1275_v6 }
 0x2d6   :  { %v1298_v8 = vmul.f32 %v1814_v39, %v1283_v15 }
 0x2d8   :  { %1306 = vst [vmem:[#allocation7 + $0x38] sm:$0xff] %v1298_v8 }
 0x2d9   :  { %1463 = shalt.err (!%p1460_p0)
}
 0x2da   :  { %s1486_s25 = smov 128   ;;  %s1487_s26 = smov 8  }
 0x2db   :  { %1318 = dma.vmem_to_hbm [thread:$0]  %s1313_s23, 1024, %s1836_s9, [#allocation4], %s1486_s25, %s1486_s25, %s1487_s26  }
 0x2dc   :  { %1476 = dma.done.wait [#allocation4], 1024  }
 0x2dd   :  { %1477 = vsyncadd [#allocation4], 4294966272 }
 0x2de   :  { %1322 = vsyncpa [#allocation3], 1 }
 0x2df   :  { %1323 = vsyncpa [#allocation6], 1 }
 0x2e0   :  { %1324 = vsyncpa [#allocation4], 1 }

</bundles_post_ra>
